<compile_context>
chip_gen: v7x
topology: tpu7x:2x2x1
jax: 0.10.0
libtpu: 0.0.40
codegen_flags: <defaults>
</compile_context>

<pallas_src>
import functools

import jax
import jax.numpy as jnp
from jax import lax
from jax.experimental import pallas as pl
from jax.experimental.pallas import tpu as pltpu


_VMEM_LIMIT_BYTES = 56 * 1024 * 1024   # <= v7x physical 64 MiB, > default scoped
_VMEM_TILE_BUDGET = 40 * 1024 * 1024   # target per-step footprint for tile choice


# ----------------------------------------------------------------------------
# Tile selection: VMEM-budget- and megacore-aware
# ----------------------------------------------------------------------------
def _layer_vmem_bytes(bt, tc, C, H, K):
    rows = bt * tc
    H3 = 3 * H
    total = 0
    total += 2 * rows * C * 2            # double-buffered bf16 x segment blocks
    total += 2 * rows * H * 2            # double-buffered bf16 output block
    total += 2 * K * C * H3 * 2          # fused bf16 weight (resident/buffered)
    total += rows * H3 * 4               # gate scratch accumulator (f32)
    total += bt * max(K - 1, 1) * H3 * 4  # gate spillover carry
    total += rows * C * 2                # in-kernel concat staging buffer
    total += 7 * rows * H * 4            # scan temporaries (a, bb, prev, o, c)
    return total


def _choose_tiles(B, T, C, H, K, budget):
    bt_cands = [d for d in range(B, 0, -1) if B % d == 0]
    tc_cands = [d for d in range(T, 0, -1)
                if T % d == 0 and (d == T or d % 8 == 0) and d >= max(K, 1)]
    if not tc_cands:
        tc_cands = [T]
    best_score, best = None, None
    for bt in bt_cands:
        for tc in tc_cands:
            if _layer_vmem_bytes(bt, tc, C, H, K) > budget:
                continue
            # Prefer >=2 batch tiles (feeds both TensorCores on v7x megacore),
            # then the largest matmul M = bt*tc, then the longest chunk.
            score = (1 if B // bt >= 2 else 0, bt * tc, tc)
            if best_score is None or score > best_score:
                best_score, best = score, (bt, tc)
    if best is None:                      # fall back to smallest legal tiles
        best = (bt_cands[-1], tc_cands[-1])
    return best


# ----------------------------------------------------------------------------
# QRNN layer kernel: fused-gate causal conv (K shifted matmuls) + fo-pooling
# ----------------------------------------------------------------------------
def _qrnn_layer_kernel(*refs, Tc, K, n_inputs, H):
    # refs: x_0..x_{n-1} (Bt, Tc, C_s) bf16, w (K, ΣC, 3H) bf16, b (1,1,3H) f32,
    #       h_out (Bt, Tc, H) bf16,
    #       g_scr (Bt, Tc, 3H) f32, cg_scr (Bt, K-1, 3H) f32, cc_scr (Bt, 1, H) f32
    x_refs = refs[:n_inputs]
    w_ref = refs[n_inputs]
    b_ref = refs[n_inputs + 1]
    h_ref = refs[n_inputs + 2]
    g_scr = refs[n_inputs + 3]
    cg_scr = refs[n_inputs + 4]
    cc_scr = refs[n_inputs + 5]

    Bt = h_ref.shape[0]
    H3 = 3 * H
    tc = pl.program_id(1)                 # T-chunk index ("arbitrary" axis)

    @pl.when(tc == 0)
    def _():                              # new batch tile -> reset carries
        cc_scr[...] = jnp.zeros_like(cc_scr)
        cg_scr[...] = jnp.zeros_like(cg_scr)

    # --- gate accumulator: zero, then add spillover from the previous chunk ---
    g_scr[...] = jnp.zeros_like(g_scr)
    if K > 1:
        g_scr[:, pl.ds(0, K - 1), :] += cg_scr[...]
        cg_scr[...] = jnp.zeros_like(cg_scr)

    # --- one fat bf16 matmul per conv tap over the concatenated segments ---
    if n_inputs > 1:
        xs = jnp.concatenate([r[...] for r in x_refs], axis=-1)   # (Bt,Tc,ΣC) bf16
    else:
        xs = x_refs[0][...]
    xs2 = xs.reshape(Bt * Tc, xs.shape[-1])                       # fold B into M

    for j in range(K):                    # static unroll over taps
        s = K - 1 - j                     # causal shift of tap j's contribution
        r = jnp.dot(xs2, w_ref[j], preferred_element_type=jnp.float32)
        r = r.reshape(Bt, Tc, H3)
        if s == 0:
            g_scr[...] += r
        else:
            # rows [0, Tc-s) of r feed this chunk's gate rows [s, Tc)
            g_scr[:, pl.ds(s, Tc - s), :] += r[:, 0:Tc - s, :]
            # rows [Tc-s, Tc) spill into the next chunk's gate rows [0, s)
            cg_scr[:, pl.ds(0, s), :] += r[:, Tc - s:Tc, :]

    g = g_scr[...] + b_ref[...]           # (1,1,3H) broadcast

    z = jnp.tanh(g[:, :, 0:H])
    f = jax.nn.sigmoid(g[:, :, H:2 * H])  # eval-mode zoneout == sigmoid
    o = jax.nn.sigmoid(g[:, :, 2 * H:3 * H])

    # --- fo-pooling: c_t = f_t*c_{t-1} + (1-f_t)*z_t, Hillis–Steele in-chunk ---
    a = f
    bb = (1.0 - f) * z                    # z, f dead past this point
    t_idx = lax.broadcasted_iota(jnp.int32, (Bt, Tc, H), 1)
    d = 1
    while d < Tc:                         # log2(Tc) full-vreg steps
        a_prev = jnp.where(t_idx >= d, pltpu.roll(a, shift=d, axis=1), 1.0)
        b_prev = jnp.where(t_idx >= d, pltpu.roll(bb, shift=d, axis=1), 0.0)
        bb = a * b_prev + bb
        a = a * a_prev
        d *= 2

    c = a * cc_scr[...] + bb              # apply carried cell state, (Bt,1,H) bcast
    cc_scr[...] = c[:, Tc - 1:Tc, :]      # carry last cell state to next chunk
    h_ref[...] = (o * c).astype(h_ref.dtype)   # single lane-dense block store


def qrnn_layer(x_segs, w_fused, b, kernel_size, *, b_tile=None, t_chunk=None):
    """x_segs: list of (B, T, C_s) bf16; w_fused: (K, ΣC_s, 3H) bf16;
    b: (3H,) f32  ->  h: (B, T, H) bf16."""
    B, T, _ = x_segs[0].shape
    H3 = b.shape[-1]
    H = H3 // 3
    K = kernel_size
    C = sum(s.shape[-1] for s in x_segs)
    assert w_fused.shape == (K, C, H3)

    bt_auto, tc_auto = _choose_tiles(B, T, C, H, K, _VMEM_TILE_BUDGET)
    b_tile = bt_auto if b_tile is None else b_tile
    t_chunk = tc_auto if t_chunk is None else t_chunk
    assert B % b_tile == 0 and T % t_chunk == 0
    assert t_chunk >= K, "t_chunk must be >= kernel_size for spillover carry"
    grid = (B // b_tile, T // t_chunk)    # batch parallel, T-chunks carry state

    in_specs = []
    for seg in x_segs:
        C_s = seg.shape[-1]
        in_specs.append(pl.BlockSpec((b_tile, t_chunk, C_s),
                                     lambda bi, ti: (bi, ti, 0)))
    in_specs.append(pl.BlockSpec((K, C, H3), lambda bi, ti: (0, 0, 0)))
    in_specs.append(pl.BlockSpec((1, 1, H3), lambda bi, ti: (0, 0, 0)))

    kern = functools.partial(_qrnn_layer_kernel, Tc=t_chunk, K=K,
                             n_inputs=len(x_segs), H=H)
    return pl.pallas_call(
        kern,
        out_shape=jax.ShapeDtypeStruct((B, T, H), jnp.bfloat16),
        grid=grid,
        in_specs=in_specs,
        out_specs=pl.BlockSpec((b_tile, t_chunk, H), lambda bi, ti: (bi, ti, 0)),
        scratch_shapes=[
            pltpu.VMEM((b_tile, t_chunk, H3), jnp.float32),       # gate accum
            pltpu.VMEM((b_tile, max(K - 1, 1), H3), jnp.float32),  # gate spillover
            pltpu.VMEM((b_tile, 1, H), jnp.float32),               # cell carry
        ],
        compiler_params=pltpu.CompilerParams(
            dimension_semantics=("parallel", "arbitrary"),
            vmem_limit_bytes=_VMEM_LIMIT_BYTES),
    )(*x_segs, w_fused, b.reshape(1, 1, H3))


# ----------------------------------------------------------------------------
# Classifier head kernel: Linear (+ optional log_softmax), lane-padded output
# ----------------------------------------------------------------------------
def _head_kernel(x_ref, w_ref, b_ref, out_ref, *, apply_sm):
    logits = jnp.dot(x_ref[...], w_ref[...],
                     preferred_element_type=jnp.float32) + b_ref[...]
    if apply_sm:
        m = jnp.max(logits, axis=-1, keepdims=True)
        lse = jnp.log(jnp.sum(jnp.exp(logits - m), axis=-1, keepdims=True)) + m
        out_ref[...] = logits - lse
    else:
        out_ref[...] = logits


def classifier_head(x, w_pad, b_pad, num_classes, *, apply_sm=True):
    """x: (B, Cin) f32; w_pad: (Cin, Np) f32 lane-padded at init;
    b_pad: (1, Np) f32 with -1e30 sentinel in padded columns."""
    Bsz = x.shape[0]
    Np = w_pad.shape[-1]
    out = pl.pallas_call(
        functools.partial(_head_kernel, apply_sm=apply_sm),
        out_shape=jax.ShapeDtypeStruct((Bsz, Np), jnp.float32),
    )(x, w_pad, b_pad)
    return out[:, :num_classes]


# ----------------------------------------------------------------------------
# Full model (glue in plain JAX)
# ----------------------------------------------------------------------------
def init_params(key, *, vocab_size, embedding_size, hidden_size, num_classes,
                num_layers, kernel_size, padding_idx=0, dense=True):
    n_qrnn = num_layers - 1
    keys = jax.random.split(key, 3 + 2 * n_qrnn)
    emb = 0.1 * jax.random.normal(keys[0], (vocab_size, embedding_size),
                                  jnp.float32)
    emb = emb.at[padding_idx].set(0.0).astype(jnp.bfloat16)   # bf16 activations

    layers = []
    input_size = embedding_size
    for l in range(n_qrnn):
        kw, kb = keys[1 + 2 * l], keys[2 + 2 * l]
        # Fused (z|f|o) gate conv weight, channel order == [h_{l-1},...,h_1,emb].
        w = 0.1 * jax.random.normal(
            kw, (kernel_size, input_size, 3 * hidden_size), jnp.float32)
        bgate = 0.1 * jax.random.normal(kb, (3 * hidden_size,), jnp.float32)
        layers.append({"w": w.astype(jnp.bfloat16), "b": bgate})
        input_size = input_size + hidden_size if dense else hidden_size

    cin = input_size
    n_pad = ((num_classes + 127) // 128) * 128   # lane-dense head output
    w_out = 0.1 * jax.random.normal(keys[-2], (cin, num_classes), jnp.float32)
    b_out = 0.1 * jax.random.normal(keys[-1], (num_classes,), jnp.float32)
    w_out_pad = jnp.zeros((cin, n_pad), jnp.float32).at[:, :num_classes].set(w_out)
    b_out_pad = jnp.full((1, n_pad), -1e30, jnp.float32).at[0, :num_classes].set(b_out)
    return {"embedding": emb, "layers": layers,
            "w_out": w_out, "b_out": b_out,
            "w_out_pad": w_out_pad, "b_out_pad": b_out_pad}


def qrnn_forward(params, tokens, *, kernel_size, dense=True, apply_sm=True,
                 b_tile=None, t_chunk=None):
    # Dense connections are carried as a LIST of bf16 channel segments
    # ([h_L, ..., h_1, emb] == torch cat order); no per-layer HBM concat of the
    # growing activation tensor is needed (segments are concatenated in-kernel).
    segs = [params["embedding"][tokens]]                    # (B, T, E) bf16
    for layer in params["layers"]:
        h = qrnn_layer(segs, layer["w"], layer["b"], kernel_size,
                       b_tile=b_tile, t_chunk=t_chunk)
        segs = ([h] + segs) if dense else [h]               # eval dropout = identity
    last = jnp.concatenate([s[:, -1, :] for s in segs],
                           axis=-1).astype(jnp.float32)     # tiny (B, Cin)
    num_classes = params["w_out"].shape[-1]
    return classifier_head(last, params["w_out_pad"], params["b_out_pad"],
                           num_classes, apply_sm=apply_sm)


# ----------------------------------------------------------------------------
# Pure-JAX reference (for a correctness check)
# ----------------------------------------------------------------------------
def _reference_forward(params, tokens, *, kernel_size, dense=True, apply_sm=True):
    K = kernel_size
    x = params["embedding"][tokens].astype(jnp.float32)
    for layer in params["layers"]:
        w = layer["w"].astype(jnp.float32)                  # (K, C, 3H)
        bgate = layer["b"]
        Bsz, T, _ = x.shape
        H = bgate.shape[-1] // 3
        xp = jnp.pad(x, ((0, 0), (K - 1, 0), (0, 0)))
        g = bgate + sum(xp[:, j:j + T, :] @ w[j] for j in range(K))
        z = jnp.tanh(g[..., :H])
        f = jax.nn.sigmoid(g[..., H:2 * H])
        o = jax.nn.sigmoid(g[..., 2 * H:])
        c = jnp.zeros((Bsz, H), jnp.float32)
        hs = []
        for t in range(T):
            c = f[:, t, :] * c + (1.0 - f[:, t, :]) * z[:, t, :]
            hs.append(o[:, t, :] * c)
        h = jnp.stack(hs, axis=1)
        x = jnp.concatenate([h, x], axis=-1) if dense else h
    last = x[:, -1, :]
    logits = last @ params["w_out"] + params["b_out"]
    return jax.nn.log_softmax(logits, axis=-1) if apply_sm else logits


if __name__ == "__main__":
    B, T = 2, 8
    VOCAB, EMB, HID = 50, 16, 32
    NUM_CLASSES, NUM_LAYERS, KSIZE = 5, 3, 3

    key = jax.random.PRNGKey(0)
    key_p, key_x, key_x2 = jax.random.split(key, 3)
    params = init_params(key_p, vocab_size=VOCAB, embedding_size=EMB,
                         hidden_size=HID, num_classes=NUM_CLASSES,
                         num_layers=NUM_LAYERS, kernel_size=KSIZE)
    tokens = jax.random.randint(key_x, (B, T), 0, VOCAB, dtype=jnp.int32)

    fwd = jax.jit(functools.partial(qrnn_forward, kernel_size=KSIZE))
    out = jax.block_until_ready(fwd(params, tokens))
    assert out.shape == (B, NUM_CLASSES)

    # log_softmax rows must sum to ~1 in prob space
    assert jnp.allclose(jnp.sum(jnp.exp(out), axis=-1), 1.0, atol=1e-4)

    # compare against the pure-JAX f32 reference (kernel uses bf16 activations)
    ref = _reference_forward(params, tokens, kernel_size=KSIZE)
    assert jnp.allclose(out, ref, atol=2.5e-2, rtol=0.0), (out, ref)

    # second check exercising the T-chunked path (gate-spillover + cell carry)
    T2 = 16
    tokens2 = jax.random.randint(key_x2, (B, T2), 0, VOCAB, dtype=jnp.int32)
    fwd_chunked = jax.jit(functools.partial(qrnn_forward, kernel_size=KSIZE,
                                            t_chunk=8))
    out2 = jax.block_until_ready(fwd_chunked(params, tokens2))
    ref2 = _reference_forward(params, tokens2, kernel_size=KSIZE)
    assert jnp.allclose(out2, ref2, atol=2.5e-2, rtol=0.0), (out2, ref2)

    print("KERNEL_OK")
</pallas_src>

<mosaic_0001>
module attributes {stable_mosaic.version = 11 : i64} {
  func.func @_qrnn_layer_kernel(%arg0: i32, %arg1: i32, %arg2: memref<1x8x32xbf16, #tpu.memory_space<vmem>>, %arg3: memref<1x8x16xbf16, #tpu.memory_space<vmem>>, %arg4: memref<3x48x96xbf16, #tpu.memory_space<vmem>>, %arg5: memref<1x1x96xf32, #tpu.memory_space<vmem>>, %arg6: memref<1x8x32xbf16, #tpu.memory_space<vmem>>, %arg7: memref<1x8x96xf32, #tpu.memory_space<vmem>>, %arg8: memref<1x2x96xf32, #tpu.memory_space<vmem>>, %arg9: memref<1x1x32xf32, #tpu.memory_space<vmem>>) attributes {dimension_semantics = [#tpu.dimension_semantics<parallel>, #tpu.dimension_semantics<arbitrary>], iteration_bounds = array<i64: 2, 1>, scalar_prefetch = 0 : i64, scratch_operands = 3 : i64, tpu.core_type = #tpu.core_type<tc>, window_params = [{transform_indices = @transform_0, window_bounds = array<i64: 1, 8, 32>}, {transform_indices = @transform_1, window_bounds = array<i64: 1, 8, 16>}, {pipeline_mode = #tpu.pipeline_mode<synchronous>, transform_indices = @transform_2, window_bounds = array<i64: 3, 48, 96>}, {pipeline_mode = #tpu.pipeline_mode<synchronous>, transform_indices = @transform_3, window_bounds = array<i64: 1, 1, 96>}, {transform_indices = @transform_4, window_bounds = array<i64: 1, 8, 32>}]} {
    %c0_i32 = arith.constant 0 : i32
    %0 = arith.cmpi eq, %arg1, %c0_i32 : i32
    %1 = arith.extui %0 : i1 to i32
    %c0_i32_0 = arith.constant 0 : i32
    %2 = arith.cmpi ne, %1, %c0_i32_0 : i32
    scf.if %2 {
      %cst_95 = arith.constant 0.000000e+00 : f32
      %116 = vector.broadcast %cst_95 : f32 to vector<1x1x32xf32>
      %c0_96 = arith.constant 0 : index
      %c0_97 = arith.constant 0 : index
      %c0_98 = arith.constant 0 : index
      %117 = vector.load %arg9[%c0_96, %c0_97, %c0_98] : memref<1x1x32xf32, #tpu.memory_space<vmem>>, vector<1x1x32xf32>
      tpu.vector_store %arg9[%c0_96, %c0_97, %c0_98], %116 {strides = array<i32>} : memref<1x1x32xf32, #tpu.memory_space<vmem>>, vector<1x1x32xf32>,
      %cst_99 = arith.constant 0.000000e+00 : f32
      %118 = vector.broadcast %cst_99 : f32 to vector<1x2x96xf32>
      %c0_100 = arith.constant 0 : index
      %c0_101 = arith.constant 0 : index
      %c0_102 = arith.constant 0 : index
      %119 = vector.load %arg8[%c0_100, %c0_101, %c0_102] : memref<1x2x96xf32, #tpu.memory_space<vmem>>, vector<1x2x96xf32>
      tpu.vector_store %arg8[%c0_100, %c0_101, %c0_102], %118 {strides = array<i32>} : memref<1x2x96xf32, #tpu.memory_space<vmem>>, vector<1x2x96xf32>,
    } else {
    }
    %cst = arith.constant 0.000000e+00 : f32
    %3 = vector.broadcast %cst : f32 to vector<1x8x96xf32>
    %c0 = arith.constant 0 : index
    %c0_1 = arith.constant 0 : index
    %c0_2 = arith.constant 0 : index
    %4 = vector.load %arg7[%c0, %c0_1, %c0_2] : memref<1x8x96xf32, #tpu.memory_space<vmem>>, vector<1x8x96xf32>
    tpu.vector_store %arg7[%c0, %c0_1, %c0_2], %3 {strides = array<i32>} : memref<1x8x96xf32, #tpu.memory_space<vmem>>, vector<1x8x96xf32>,
    %c0_3 = arith.constant 0 : index
    %c0_4 = arith.constant 0 : index
    %c0_5 = arith.constant 0 : index
    %5 = vector.load %arg7[%c0_3, %c0_4, %c0_5] : memref<1x8x96xf32, #tpu.memory_space<vmem>>, vector<1x2x96xf32>
    %c0_6 = arith.constant 0 : index
    %c0_7 = arith.constant 0 : index
    %c0_8 = arith.constant 0 : index
    %6 = vector.load %arg8[%c0_6, %c0_7, %c0_8] : memref<1x2x96xf32, #tpu.memory_space<vmem>>, vector<1x2x96xf32>
    %7 = arith.addf %5, %6 : vector<1x2x96xf32>
    %c0_9 = arith.constant 0 : index
    %c0_10 = arith.constant 0 : index
    %c0_11 = arith.constant 0 : index
    %8 = vector.load %arg7[%c0_9, %c0_10, %c0_11] : memref<1x8x96xf32, #tpu.memory_space<vmem>>, vector<1x2x96xf32>
    tpu.vector_store %arg7[%c0_9, %c0_10, %c0_11], %7 {strides = array<i32>} : memref<1x8x96xf32, #tpu.memory_space<vmem>>, vector<1x2x96xf32>,
    %cst_12 = arith.constant 0.000000e+00 : f32
    %9 = vector.broadcast %cst_12 : f32 to vector<1x2x96xf32>
    %c0_13 = arith.constant 0 : index
    %c0_14 = arith.constant 0 : index
    %c0_15 = arith.constant 0 : index
    %10 = vector.load %arg8[%c0_13, %c0_14, %c0_15] : memref<1x2x96xf32, #tpu.memory_space<vmem>>, vector<1x2x96xf32>
    tpu.vector_store %arg8[%c0_13, %c0_14, %c0_15], %9 {strides = array<i32>} : memref<1x2x96xf32, #tpu.memory_space<vmem>>, vector<1x2x96xf32>,
    %c0_16 = arith.constant 0 : index
    %c0_17 = arith.constant 0 : index
    %c0_18 = arith.constant 0 : index
    %11 = vector.load %arg2[%c0_16, %c0_17, %c0_18] : memref<1x8x32xbf16, #tpu.memory_space<vmem>>, vector<1x8x32xbf16>
    %c0_19 = arith.constant 0 : index
    %c0_20 = arith.constant 0 : index
    %c0_21 = arith.constant 0 : index
    %12 = vector.load %arg3[%c0_19, %c0_20, %c0_21] : memref<1x8x16xbf16, #tpu.memory_space<vmem>>, vector<1x8x16xbf16>
    %13 = tpu.concatenate %11, %12 in 2 : vector<1x8x32xbf16>, vector<1x8x16xbf16> -> vector<1x8x48xbf16>
    %14 = vector.shape_cast %13 : vector<1x8x48xbf16> to vector<8x48xbf16>
    %c0_22 = arith.constant 0 : index
    %c0_23 = arith.constant 0 : index
    %c0_24 = arith.constant 0 : index
    %15 = vector.load %arg4[%c0_22, %c0_23, %c0_24] : memref<3x48x96xbf16, #tpu.memory_space<vmem>>, vector<1x48x96xbf16>
    %16 = vector.shape_cast %15 : vector<1x48x96xbf16> to vector<48x96xbf16>
    %cst_25 = arith.constant dense<0.000000e+00> : vector<8x96xf32>
    %17 = tpu.matmul %14, %16, %cst_25 {dimension_numbers = #tpu.dot_dimension_numbers<[1], [0], [0], [1], [0, 0, 1, 1], [], []>} : vector<8x48xbf16>, vector<48x96xbf16>, vector<8x96xf32> -> vector<8x96xf32>
    %18 = vector.shape_cast %17 : vector<8x96xf32> to vector<1x8x96xf32>
    %c0_26 = arith.constant 0 : index
    %c2 = arith.constant 2 : index
    %c0_27 = arith.constant 0 : index
    %19 = vector.load %arg7[%c0_26, %c2, %c0_27] : memref<1x8x96xf32, #tpu.memory_space<vmem>>, vector<1x6x96xf32>
    %20 = vector.extract_strided_slice %18 {offsets = [0, 0, 0], sizes = [1, 6, 96], strides = [1, 1, 1]} : vector<1x8x96xf32> to vector<1x6x96xf32>
    %21 = arith.addf %19, %20 : vector<1x6x96xf32>
    %c0_28 = arith.constant 0 : index
    %c2_29 = arith.constant 2 : index
    %c0_30 = arith.constant 0 : index
    %22 = vector.load %arg7[%c0_28, %c2_29, %c0_30] : memref<1x8x96xf32, #tpu.memory_space<vmem>>, vector<1x6x96xf32>
    tpu.vector_store %arg7[%c0_28, %c2_29, %c0_30], %21 {strides = array<i32>} : memref<1x8x96xf32, #tpu.memory_space<vmem>>, vector<1x6x96xf32>,
    %c0_31 = arith.constant 0 : index
    %c0_32 = arith.constant 0 : index
    %c0_33 = arith.constant 0 : index
    %23 = vector.load %arg8[%c0_31, %c0_32, %c0_33] : memref<1x2x96xf32, #tpu.memory_space<vmem>>, vector<1x2x96xf32>
    %24 = vector.extract_strided_slice %18 {offsets = [0, 6, 0], sizes = [1, 2, 96], strides = [1, 1, 1]} : vector<1x8x96xf32> to vector<1x2x96xf32>
    %25 = arith.addf %23, %24 : vector<1x2x96xf32>
    %c0_34 = arith.constant 0 : index
    %c0_35 = arith.constant 0 : index
    %c0_36 = arith.constant 0 : index
    %26 = vector.load %arg8[%c0_34, %c0_35, %c0_36] : memref<1x2x96xf32, #tpu.memory_space<vmem>>, vector<1x2x96xf32>
    tpu.vector_store %arg8[%c0_34, %c0_35, %c0_36], %25 {strides = array<i32>} : memref<1x2x96xf32, #tpu.memory_space<vmem>>, vector<1x2x96xf32>,
    %c1 = arith.constant 1 : index
    %c0_37 = arith.constant 0 : index
    %c0_38 = arith.constant 0 : index
    %27 = vector.load %arg4[%c1, %c0_37, %c0_38] : memref<3x48x96xbf16, #tpu.memory_space<vmem>>, vector<1x48x96xbf16>
    %28 = vector.shape_cast %27 : vector<1x48x96xbf16> to vector<48x96xbf16>
    %cst_39 = arith.constant dense<0.000000e+00> : vector<8x96xf32>
    %29 = tpu.matmul %14, %28, %cst_39 {dimension_numbers = #tpu.dot_dimension_numbers<[1], [0], [0], [1], [0, 0, 1, 1], [], []>} : vector<8x48xbf16>, vector<48x96xbf16>, vector<8x96xf32> -> vector<8x96xf32>
    %30 = vector.shape_cast %29 : vector<8x96xf32> to vector<1x8x96xf32>
    %c0_40 = arith.constant 0 : index
    %c1_41 = arith.constant 1 : index
    %c0_42 = arith.constant 0 : index
    %31 = vector.load %arg7[%c0_40, %c1_41, %c0_42] : memref<1x8x96xf32, #tpu.memory_space<vmem>>, vector<1x7x96xf32>
    %32 = vector.extract_strided_slice %30 {offsets = [0, 0, 0], sizes = [1, 7, 96], strides = [1, 1, 1]} : vector<1x8x96xf32> to vector<1x7x96xf32>
    %33 = arith.addf %31, %32 : vector<1x7x96xf32>
    %c0_43 = arith.constant 0 : index
    %c1_44 = arith.constant 1 : index
    %c0_45 = arith.constant 0 : index
    %34 = vector.load %arg7[%c0_43, %c1_44, %c0_45] : memref<1x8x96xf32, #tpu.memory_space<vmem>>, vector<1x7x96xf32>
    tpu.vector_store %arg7[%c0_43, %c1_44, %c0_45], %33 {strides = array<i32>} : memref<1x8x96xf32, #tpu.memory_space<vmem>>, vector<1x7x96xf32>,
    %c0_46 = arith.constant 0 : index
    %c0_47 = arith.constant 0 : index
    %c0_48 = arith.constant 0 : index
    %35 = vector.load %arg8[%c0_46, %c0_47, %c0_48] : memref<1x2x96xf32, #tpu.memory_space<vmem>>, vector<1x1x96xf32>
    %36 = vector.extract_strided_slice %30 {offsets = [0, 7, 0], sizes = [1, 1, 96], strides = [1, 1, 1]} : vector<1x8x96xf32> to vector<1x1x96xf32>
    %37 = arith.addf %35, %36 : vector<1x1x96xf32>
    %c0_49 = arith.constant 0 : index
    %c0_50 = arith.constant 0 : index
    %c0_51 = arith.constant 0 : index
    %38 = vector.load %arg8[%c0_49, %c0_50, %c0_51] : memref<1x2x96xf32, #tpu.memory_space<vmem>>, vector<1x1x96xf32>
    tpu.vector_store %arg8[%c0_49, %c0_50, %c0_51], %37 {strides = array<i32>} : memref<1x2x96xf32, #tpu.memory_space<vmem>>, vector<1x1x96xf32>,
    %c2_52 = arith.constant 2 : index
    %c0_53 = arith.constant 0 : index
    %c0_54 = arith.constant 0 : index
    %39 = vector.load %arg4[%c2_52, %c0_53, %c0_54] : memref<3x48x96xbf16, #tpu.memory_space<vmem>>, vector<1x48x96xbf16>
    %40 = vector.shape_cast %39 : vector<1x48x96xbf16> to vector<48x96xbf16>
    %cst_55 = arith.constant dense<0.000000e+00> : vector<8x96xf32>
    %41 = tpu.matmul %14, %40, %cst_55 {dimension_numbers = #tpu.dot_dimension_numbers<[1], [0], [0], [1], [0, 0, 1, 1], [], []>} : vector<8x48xbf16>, vector<48x96xbf16>, vector<8x96xf32> -> vector<8x96xf32>
    %42 = vector.shape_cast %41 : vector<8x96xf32> to vector<1x8x96xf32>
    %c0_56 = arith.constant 0 : index
    %c0_57 = arith.constant 0 : index
    %c0_58 = arith.constant 0 : index
    %43 = vector.load %arg7[%c0_56, %c0_57, %c0_58] : memref<1x8x96xf32, #tpu.memory_space<vmem>>, vector<1x8x96xf32>
    %44 = arith.addf %43, %42 : vector<1x8x96xf32>
    %c0_59 = arith.constant 0 : index
    %c0_60 = arith.constant 0 : index
    %c0_61 = arith.constant 0 : index
    %45 = vector.load %arg7[%c0_59, %c0_60, %c0_61] : memref<1x8x96xf32, #tpu.memory_space<vmem>>, vector<1x8x96xf32>
    tpu.vector_store %arg7[%c0_59, %c0_60, %c0_61], %44 {strides = array<i32>} : memref<1x8x96xf32, #tpu.memory_space<vmem>>, vector<1x8x96xf32>,
    %c0_62 = arith.constant 0 : index
    %c0_63 = arith.constant 0 : index
    %c0_64 = arith.constant 0 : index
    %46 = vector.load %arg7[%c0_62, %c0_63, %c0_64] : memref<1x8x96xf32, #tpu.memory_space<vmem>>, vector<1x8x96xf32>
    %c0_65 = arith.constant 0 : index
    %c0_66 = arith.constant 0 : index
    %c0_67 = arith.constant 0 : index
    %47 = vector.load %arg5[%c0_65, %c0_66, %c0_67] : memref<1x1x96xf32, #tpu.memory_space<vmem>>, vector<1x1x96xf32>
    %48 = vector.broadcast %47 : vector<1x1x96xf32> to vector<1x8x96xf32>
    %49 = arith.addf %46, %48 : vector<1x8x96xf32>
    %50 = vector.extract_strided_slice %49 {offsets = [0, 0, 0], sizes = [1, 8, 32], strides = [1, 1, 1]} : vector<1x8x96xf32> to vector<1x8x32xf32>
    %51 = math.tanh %50 : vector<1x8x32xf32>
    %52 = vector.extract_strided_slice %49 {offsets = [0, 0, 32], sizes = [1, 8, 32], strides = [1, 1, 1]} : vector<1x8x96xf32> to vector<1x8x32xf32>
    %53 = arith.negf %52 : vector<1x8x32xf32>
    %54 = math.exp %53 : vector<1x8x32xf32>
    %cst_68 = arith.constant 1.000000e+00 : f32
    %55 = vector.broadcast %cst_68 : f32 to vector<1x8x32xf32>
    %56 = arith.addf %55, %54 : vector<1x8x32xf32>
    %57 = arith.divf %55, %56 : vector<1x8x32xf32>
    %58 = vector.extract_strided_slice %49 {offsets = [0, 0, 64], sizes = [1, 8, 32], strides = [1, 1, 1]} : vector<1x8x96xf32> to vector<1x8x32xf32>
    %59 = arith.negf %58 : vector<1x8x32xf32>
    %60 = math.exp %59 : vector<1x8x32xf32>
    %cst_69 = arith.constant 1.000000e+00 : f32
    %61 = vector.broadcast %cst_69 : f32 to vector<1x8x32xf32>
    %62 = arith.addf %61, %60 : vector<1x8x32xf32>
    %63 = arith.divf %61, %62 : vector<1x8x32xf32>
    %cst_70 = arith.constant 1.000000e+00 : f32
    %64 = vector.broadcast %cst_70 : f32 to vector<1x8x32xf32>
    %65 = arith.subf %64, %57 : vector<1x8x32xf32>
    %66 = arith.mulf %65, %51 : vector<1x8x32xf32>
    %67 = tpu.iota {dimensions = array<i32: 1>} : vector<1x8x32xi32>
    %c1_i32 = arith.constant 1 : i32
    %68 = vector.broadcast %c1_i32 : i32 to vector<1x8x32xi32>
    %69 = arith.cmpi sge, %67, %68 : vector<1x8x32xi32>
    %c1_i32_71 = arith.constant 1 : i32
    %70 = tpu.dynamic_rotate %57 by %c1_i32_71 dim 1 : vector<1x8x32xf32>, i32 -> vector<1x8x32xf32>
    %cst_72 = arith.constant 1.000000e+00 : f32
    %71 = vector.broadcast %cst_72 : f32 to vector<1x8x32xf32>
    %72 = arith.select %69, %70, %71 : vector<1x8x32xi1>, vector<1x8x32xf32>
    %c1_i32_73 = arith.constant 1 : i32
    %73 = vector.broadcast %c1_i32_73 : i32 to vector<1x8x32xi32>
    %74 = arith.cmpi sge, %67, %73 : vector<1x8x32xi32>
    %c1_i32_74 = arith.constant 1 : i32
    %75 = tpu.dynamic_rotate %66 by %c1_i32_74 dim 1 : vector<1x8x32xf32>, i32 -> vector<1x8x32xf32>
    %cst_75 = arith.constant 0.000000e+00 : f32
    %76 = vector.broadcast %cst_75 : f32 to vector<1x8x32xf32>
    %77 = arith.select %74, %75, %76 : vector<1x8x32xi1>, vector<1x8x32xf32>
    %78 = arith.mulf %57, %77 : vector<1x8x32xf32>
    %79 = arith.addf %78, %66 : vector<1x8x32xf32>
    %80 = arith.mulf %57, %72 : vector<1x8x32xf32>
    %c2_i32 = arith.constant 2 : i32
    %81 = vector.broadcast %c2_i32 : i32 to vector<1x8x32xi32>
    %82 = arith.cmpi sge, %67, %81 : vector<1x8x32xi32>
    %c2_i32_76 = arith.constant 2 : i32
    %83 = tpu.dynamic_rotate %80 by %c2_i32_76 dim 1 : vector<1x8x32xf32>, i32 -> vector<1x8x32xf32>
    %cst_77 = arith.constant 1.000000e+00 : f32
    %84 = vector.broadcast %cst_77 : f32 to vector<1x8x32xf32>
    %85 = arith.select %82, %83, %84 : vector<1x8x32xi1>, vector<1x8x32xf32>
    %c2_i32_78 = arith.constant 2 : i32
    %86 = vector.broadcast %c2_i32_78 : i32 to vector<1x8x32xi32>
    %87 = arith.cmpi sge, %67, %86 : vector<1x8x32xi32>
    %c2_i32_79 = arith.constant 2 : i32
    %88 = tpu.dynamic_rotate %79 by %c2_i32_79 dim 1 : vector<1x8x32xf32>, i32 -> vector<1x8x32xf32>
    %cst_80 = arith.constant 0.000000e+00 : f32
    %89 = vector.broadcast %cst_80 : f32 to vector<1x8x32xf32>
    %90 = arith.select %87, %88, %89 : vector<1x8x32xi1>, vector<1x8x32xf32>
    %91 = arith.mulf %80, %90 : vector<1x8x32xf32>
    %92 = arith.addf %91, %79 : vector<1x8x32xf32>
    %93 = arith.mulf %80, %85 : vector<1x8x32xf32>
    %c4_i32 = arith.constant 4 : i32
    %94 = vector.broadcast %c4_i32 : i32 to vector<1x8x32xi32>
    %95 = arith.cmpi sge, %67, %94 : vector<1x8x32xi32>
    %c4_i32_81 = arith.constant 4 : i32
    %96 = tpu.dynamic_rotate %93 by %c4_i32_81 dim 1 : vector<1x8x32xf32>, i32 -> vector<1x8x32xf32>
    %cst_82 = arith.constant 1.000000e+00 : f32
    %97 = vector.broadcast %cst_82 : f32 to vector<1x8x32xf32>
    %98 = arith.select %95, %96, %97 : vector<1x8x32xi1>, vector<1x8x32xf32>
    %c4_i32_83 = arith.constant 4 : i32
    %99 = vector.broadcast %c4_i32_83 : i32 to vector<1x8x32xi32>
    %100 = arith.cmpi sge, %67, %99 : vector<1x8x32xi32>
    %c4_i32_84 = arith.constant 4 : i32
    %101 = tpu.dynamic_rotate %92 by %c4_i32_84 dim 1 : vector<1x8x32xf32>, i32 -> vector<1x8x32xf32>
    %cst_85 = arith.constant 0.000000e+00 : f32
    %102 = vector.broadcast %cst_85 : f32 to vector<1x8x32xf32>
    %103 = arith.select %100, %101, %102 : vector<1x8x32xi1>, vector<1x8x32xf32>
    %104 = arith.mulf %93, %103 : vector<1x8x32xf32>
    %105 = arith.addf %104, %92 : vector<1x8x32xf32>
    %106 = arith.mulf %93, %98 : vector<1x8x32xf32>
    %c0_86 = arith.constant 0 : index
    %c0_87 = arith.constant 0 : index
    %c0_88 = arith.constant 0 : index
    %107 = vector.load %arg9[%c0_86, %c0_87, %c0_88] : memref<1x1x32xf32, #tpu.memory_space<vmem>>, vector<1x1x32xf32>
    %108 = vector.broadcast %107 : vector<1x1x32xf32> to vector<1x8x32xf32>
    %109 = arith.mulf %106, %108 : vector<1x8x32xf32>
    %110 = arith.addf %109, %105 : vector<1x8x32xf32>
    %111 = vector.extract_strided_slice %110 {offsets = [0, 7, 0], sizes = [1, 1, 32], strides = [1, 1, 1]} : vector<1x8x32xf32> to vector<1x1x32xf32>
    %c0_89 = arith.constant 0 : index
    %c0_90 = arith.constant 0 : index
    %c0_91 = arith.constant 0 : index
    %112 = vector.load %arg9[%c0_89, %c0_90, %c0_91] : memref<1x1x32xf32, #tpu.memory_space<vmem>>, vector<1x1x32xf32>
    tpu.vector_store %arg9[%c0_89, %c0_90, %c0_91], %111 {strides = array<i32>} : memref<1x1x32xf32, #tpu.memory_space<vmem>>, vector<1x1x32xf32>,
    %113 = arith.mulf %63, %110 : vector<1x8x32xf32>
    %114 = arith.truncf %113 : vector<1x8x32xf32> to vector<1x8x32xbf16>
    %c0_92 = arith.constant 0 : index
    %c0_93 = arith.constant 0 : index
    %c0_94 = arith.constant 0 : index
    %115 = vector.load %arg6[%c0_92, %c0_93, %c0_94] : memref<1x8x32xbf16, #tpu.memory_space<vmem>>, vector<1x8x32xbf16>
    tpu.vector_store %arg6[%c0_92, %c0_93, %c0_94], %114 {strides = array<i32>} : memref<1x8x32xbf16, #tpu.memory_space<vmem>>, vector<1x8x32xbf16>,
    return
  }
  func.func @transform_0(%arg0: i32, %arg1: i32) -> (i32, i32, i32) {
    %c0_i32 = arith.constant 0 : i32
    %c0_i32_0 = arith.constant 0 : i32
    return %arg0, %arg1, %c0_i32 : i32, i32, i32
  }
  func.func @transform_1(%arg0: i32, %arg1: i32) -> (i32, i32, i32) {
    %c0_i32 = arith.constant 0 : i32
    %c0_i32_0 = arith.constant 0 : i32
    return %arg0, %arg1, %c0_i32 : i32, i32, i32
  }
  func.func @transform_2(%arg0: i32, %arg1: i32) -> (i32, i32, i32) {
    %c0_i32 = arith.constant 0 : i32
    %c0_i32_0 = arith.constant 0 : i32
    %c0_i32_1 = arith.constant 0 : i32
    %c0_i32_2 = arith.constant 0 : i32
    return %c0_i32, %c0_i32_0, %c0_i32_1 : i32, i32, i32
  }
  func.func @transform_3(%arg0: i32, %arg1: i32) -> (i32, i32, i32) {
    %c0_i32 = arith.constant 0 : i32
    %c0_i32_0 = arith.constant 0 : i32
    %c0_i32_1 = arith.constant 0 : i32
    %c0_i32_2 = arith.constant 0 : i32
    return %c0_i32, %c0_i32_0, %c0_i32_1 : i32, i32, i32
  }
  func.func @transform_4(%arg0: i32, %arg1: i32) -> (i32, i32, i32) {
    %c0_i32 = arith.constant 0 : i32
    %c0_i32_0 = arith.constant 0 : i32
    return %arg0, %arg1, %c0_i32 : i32, i32, i32
  }
}

module attributes {stable_mosaic.version = 11 : i64} {
  func.func @_qrnn_layer_kernel(%arg0: i32, %arg1: i32, %arg2: memref<1x8x16xbf16, #tpu.memory_space<vmem>>, %arg3: memref<3x16x96xbf16, #tpu.memory_space<vmem>>, %arg4: memref<1x1x96xf32, #tpu.memory_space<vmem>>, %arg5: memref<1x8x32xbf16, #tpu.memory_space<vmem>>, %arg6: memref<1x8x96xf32, #tpu.memory_space<vmem>>, %arg7: memref<1x2x96xf32, #tpu.memory_space<vmem>>, %arg8: memref<1x1x32xf32, #tpu.memory_space<vmem>>) attributes {dimension_semantics = [#tpu.dimension_semantics<parallel>, #tpu.dimension_semantics<arbitrary>], iteration_bounds = array<i64: 2, 1>, scalar_prefetch = 0 : i64, scratch_operands = 3 : i64, tpu.core_type = #tpu.core_type<tc>, window_params = [{transform_indices = @transform_0, window_bounds = array<i64: 1, 8, 16>}, {pipeline_mode = #tpu.pipeline_mode<synchronous>, transform_indices = @transform_1, window_bounds = array<i64: 3, 16, 96>}, {pipeline_mode = #tpu.pipeline_mode<synchronous>, transform_indices = @transform_2, window_bounds = array<i64: 1, 1, 96>}, {transform_indices = @transform_3, window_bounds = array<i64: 1, 8, 32>}]} {
    %c0_i32 = arith.constant 0 : i32
    %0 = arith.cmpi eq, %arg1, %c0_i32 : i32
    %1 = arith.extui %0 : i1 to i32
    %c0_i32_0 = arith.constant 0 : i32
    %2 = arith.cmpi ne, %1, %c0_i32_0 : i32
    scf.if %2 {
      %cst_92 = arith.constant 0.000000e+00 : f32
      %114 = vector.broadcast %cst_92 : f32 to vector<1x1x32xf32>
      %c0_93 = arith.constant 0 : index
      %c0_94 = arith.constant 0 : index
      %c0_95 = arith.constant 0 : index
      %115 = vector.load %arg8[%c0_93, %c0_94, %c0_95] : memref<1x1x32xf32, #tpu.memory_space<vmem>>, vector<1x1x32xf32>
      tpu.vector_store %arg8[%c0_93, %c0_94, %c0_95], %114 {strides = array<i32>} : memref<1x1x32xf32, #tpu.memory_space<vmem>>, vector<1x1x32xf32>,
      %cst_96 = arith.constant 0.000000e+00 : f32
      %116 = vector.broadcast %cst_96 : f32 to vector<1x2x96xf32>
      %c0_97 = arith.constant 0 : index
      %c0_98 = arith.constant 0 : index
      %c0_99 = arith.constant 0 : index
      %117 = vector.load %arg7[%c0_97, %c0_98, %c0_99] : memref<1x2x96xf32, #tpu.memory_space<vmem>>, vector<1x2x96xf32>
      tpu.vector_store %arg7[%c0_97, %c0_98, %c0_99], %116 {strides = array<i32>} : memref<1x2x96xf32, #tpu.memory_space<vmem>>, vector<1x2x96xf32>,
    } else {
    }
    %cst = arith.constant 0.000000e+00 : f32
    %3 = vector.broadcast %cst : f32 to vector<1x8x96xf32>
    %c0 = arith.constant 0 : index
    %c0_1 = arith.constant 0 : index
    %c0_2 = arith.constant 0 : index
    %4 = vector.load %arg6[%c0, %c0_1, %c0_2] : memref<1x8x96xf32, #tpu.memory_space<vmem>>, vector<1x8x96xf32>
    tpu.vector_store %arg6[%c0, %c0_1, %c0_2], %3 {strides = array<i32>} : memref<1x8x96xf32, #tpu.memory_space<vmem>>, vector<1x8x96xf32>,
    %c0_3 = arith.constant 0 : index
    %c0_4 = arith.constant 0 : index
    %c0_5 = arith.constant 0 : index
    %5 = vector.load %arg6[%c0_3, %c0_4, %c0_5] : memref<1x8x96xf32, #tpu.memory_space<vmem>>, vector<1x2x96xf32>
    %c0_6 = arith.constant 0 : index
    %c0_7 = arith.constant 0 : index
    %c0_8 = arith.constant 0 : index
    %6 = vector.load %arg7[%c0_6, %c0_7, %c0_8] : memref<1x2x96xf32, #tpu.memory_space<vmem>>, vector<1x2x96xf32>
    %7 = arith.addf %5, %6 : vector<1x2x96xf32>
    %c0_9 = arith.constant 0 : index
    %c0_10 = arith.constant 0 : index
    %c0_11 = arith.constant 0 : index
    %8 = vector.load %arg6[%c0_9, %c0_10, %c0_11] : memref<1x8x96xf32, #tpu.memory_space<vmem>>, vector<1x2x96xf32>
    tpu.vector_store %arg6[%c0_9, %c0_10, %c0_11], %7 {strides = array<i32>} : memref<1x8x96xf32, #tpu.memory_space<vmem>>, vector<1x2x96xf32>,
    %cst_12 = arith.constant 0.000000e+00 : f32
    %9 = vector.broadcast %cst_12 : f32 to vector<1x2x96xf32>
    %c0_13 = arith.constant 0 : index
    %c0_14 = arith.constant 0 : index
    %c0_15 = arith.constant 0 : index
    %10 = vector.load %arg7[%c0_13, %c0_14, %c0_15] : memref<1x2x96xf32, #tpu.memory_space<vmem>>, vector<1x2x96xf32>
    tpu.vector_store %arg7[%c0_13, %c0_14, %c0_15], %9 {strides = array<i32>} : memref<1x2x96xf32, #tpu.memory_space<vmem>>, vector<1x2x96xf32>,
    %c0_16 = arith.constant 0 : index
    %c0_17 = arith.constant 0 : index
    %c0_18 = arith.constant 0 : index
    %11 = vector.load %arg2[%c0_16, %c0_17, %c0_18] : memref<1x8x16xbf16, #tpu.memory_space<vmem>>, vector<1x8x16xbf16>
    %12 = vector.shape_cast %11 : vector<1x8x16xbf16> to vector<8x16xbf16>
    %c0_19 = arith.constant 0 : index
    %c0_20 = arith.constant 0 : index
    %c0_21 = arith.constant 0 : index
    %13 = vector.load %arg3[%c0_19, %c0_20, %c0_21] : memref<3x16x96xbf16, #tpu.memory_space<vmem>>, vector<1x16x96xbf16>
    %14 = vector.shape_cast %13 : vector<1x16x96xbf16> to vector<16x96xbf16>
    %cst_22 = arith.constant dense<0.000000e+00> : vector<8x96xf32>
    %15 = tpu.matmul %12, %14, %cst_22 {dimension_numbers = #tpu.dot_dimension_numbers<[1], [0], [0], [1], [0, 0, 1, 1], [], []>} : vector<8x16xbf16>, vector<16x96xbf16>, vector<8x96xf32> -> vector<8x96xf32>
    %16 = vector.shape_cast %15 : vector<8x96xf32> to vector<1x8x96xf32>
    %c0_23 = arith.constant 0 : index
    %c2 = arith.constant 2 : index
    %c0_24 = arith.constant 0 : index
    %17 = vector.load %arg6[%c0_23, %c2, %c0_24] : memref<1x8x96xf32, #tpu.memory_space<vmem>>, vector<1x6x96xf32>
    %18 = vector.extract_strided_slice %16 {offsets = [0, 0, 0], sizes = [1, 6, 96], strides = [1, 1, 1]} : vector<1x8x96xf32> to vector<1x6x96xf32>
    %19 = arith.addf %17, %18 : vector<1x6x96xf32>
    %c0_25 = arith.constant 0 : index
    %c2_26 = arith.constant 2 : index
    %c0_27 = arith.constant 0 : index
    %20 = vector.load %arg6[%c0_25, %c2_26, %c0_27] : memref<1x8x96xf32, #tpu.memory_space<vmem>>, vector<1x6x96xf32>
    tpu.vector_store %arg6[%c0_25, %c2_26, %c0_27], %19 {strides = array<i32>} : memref<1x8x96xf32, #tpu.memory_space<vmem>>, vector<1x6x96xf32>,
    %c0_28 = arith.constant 0 : index
    %c0_29 = arith.constant 0 : index
    %c0_30 = arith.constant 0 : index
    %21 = vector.load %arg7[%c0_28, %c0_29, %c0_30] : memref<1x2x96xf32, #tpu.memory_space<vmem>>, vector<1x2x96xf32>
    %22 = vector.extract_strided_slice %16 {offsets = [0, 6, 0], sizes = [1, 2, 96], strides = [1, 1, 1]} : vector<1x8x96xf32> to vector<1x2x96xf32>
    %23 = arith.addf %21, %22 : vector<1x2x96xf32>
    %c0_31 = arith.constant 0 : index
    %c0_32 = arith.constant 0 : index
    %c0_33 = arith.constant 0 : index
    %24 = vector.load %arg7[%c0_31, %c0_32, %c0_33] : memref<1x2x96xf32, #tpu.memory_space<vmem>>, vector<1x2x96xf32>
    tpu.vector_store %arg7[%c0_31, %c0_32, %c0_33], %23 {strides = array<i32>} : memref<1x2x96xf32, #tpu.memory_space<vmem>>, vector<1x2x96xf32>,
    %c1 = arith.constant 1 : index
    %c0_34 = arith.constant 0 : index
    %c0_35 = arith.constant 0 : index
    %25 = vector.load %arg3[%c1, %c0_34, %c0_35] : memref<3x16x96xbf16, #tpu.memory_space<vmem>>, vector<1x16x96xbf16>
    %26 = vector.shape_cast %25 : vector<1x16x96xbf16> to vector<16x96xbf16>
    %cst_36 = arith.constant dense<0.000000e+00> : vector<8x96xf32>
    %27 = tpu.matmul %12, %26, %cst_36 {dimension_numbers = #tpu.dot_dimension_numbers<[1], [0], [0], [1], [0, 0, 1, 1], [], []>} : vector<8x16xbf16>, vector<16x96xbf16>, vector<8x96xf32> -> vector<8x96xf32>
    %28 = vector.shape_cast %27 : vector<8x96xf32> to vector<1x8x96xf32>
    %c0_37 = arith.constant 0 : index
    %c1_38 = arith.constant 1 : index
    %c0_39 = arith.constant 0 : index
    %29 = vector.load %arg6[%c0_37, %c1_38, %c0_39] : memref<1x8x96xf32, #tpu.memory_space<vmem>>, vector<1x7x96xf32>
    %30 = vector.extract_strided_slice %28 {offsets = [0, 0, 0], sizes = [1, 7, 96], strides = [1, 1, 1]} : vector<1x8x96xf32> to vector<1x7x96xf32>
    %31 = arith.addf %29, %30 : vector<1x7x96xf32>
    %c0_40 = arith.constant 0 : index
    %c1_41 = arith.constant 1 : index
    %c0_42 = arith.constant 0 : index
    %32 = vector.load %arg6[%c0_40, %c1_41, %c0_42] : memref<1x8x96xf32, #tpu.memory_space<vmem>>, vector<1x7x96xf32>
    tpu.vector_store %arg6[%c0_40, %c1_41, %c0_42], %31 {strides = array<i32>} : memref<1x8x96xf32, #tpu.memory_space<vmem>>, vector<1x7x96xf32>,
    %c0_43 = arith.constant 0 : index
    %c0_44 = arith.constant 0 : index
    %c0_45 = arith.constant 0 : index
    %33 = vector.load %arg7[%c0_43, %c0_44, %c0_45] : memref<1x2x96xf32, #tpu.memory_space<vmem>>, vector<1x1x96xf32>
    %34 = vector.extract_strided_slice %28 {offsets = [0, 7, 0], sizes = [1, 1, 96], strides = [1, 1, 1]} : vector<1x8x96xf32> to vector<1x1x96xf32>
    %35 = arith.addf %33, %34 : vector<1x1x96xf32>
    %c0_46 = arith.constant 0 : index
    %c0_47 = arith.constant 0 : index
    %c0_48 = arith.constant 0 : index
    %36 = vector.load %arg7[%c0_46, %c0_47, %c0_48] : memref<1x2x96xf32, #tpu.memory_space<vmem>>, vector<1x1x96xf32>
    tpu.vector_store %arg7[%c0_46, %c0_47, %c0_48], %35 {strides = array<i32>} : memref<1x2x96xf32, #tpu.memory_space<vmem>>, vector<1x1x96xf32>,
    %c2_49 = arith.constant 2 : index
    %c0_50 = arith.constant 0 : index
    %c0_51 = arith.constant 0 : index
    %37 = vector.load %arg3[%c2_49, %c0_50, %c0_51] : memref<3x16x96xbf16, #tpu.memory_space<vmem>>, vector<1x16x96xbf16>
    %38 = vector.shape_cast %37 : vector<1x16x96xbf16> to vector<16x96xbf16>
    %cst_52 = arith.constant dense<0.000000e+00> : vector<8x96xf32>
    %39 = tpu.matmul %12, %38, %cst_52 {dimension_numbers = #tpu.dot_dimension_numbers<[1], [0], [0], [1], [0, 0, 1, 1], [], []>} : vector<8x16xbf16>, vector<16x96xbf16>, vector<8x96xf32> -> vector<8x96xf32>
    %40 = vector.shape_cast %39 : vector<8x96xf32> to vector<1x8x96xf32>
    %c0_53 = arith.constant 0 : index
    %c0_54 = arith.constant 0 : index
    %c0_55 = arith.constant 0 : index
    %41 = vector.load %arg6[%c0_53, %c0_54, %c0_55] : memref<1x8x96xf32, #tpu.memory_space<vmem>>, vector<1x8x96xf32>
    %42 = arith.addf %41, %40 : vector<1x8x96xf32>
    %c0_56 = arith.constant 0 : index
    %c0_57 = arith.constant 0 : index
    %c0_58 = arith.constant 0 : index
    %43 = vector.load %arg6[%c0_56, %c0_57, %c0_58] : memref<1x8x96xf32, #tpu.memory_space<vmem>>, vector<1x8x96xf32>
    tpu.vector_store %arg6[%c0_56, %c0_57, %c0_58], %42 {strides = array<i32>} : memref<1x8x96xf32, #tpu.memory_space<vmem>>, vector<1x8x96xf32>,
    %c0_59 = arith.constant 0 : index
    %c0_60 = arith.constant 0 : index
    %c0_61 = arith.constant 0 : index
    %44 = vector.load %arg6[%c0_59, %c0_60, %c0_61] : memref<1x8x96xf32, #tpu.memory_space<vmem>>, vector<1x8x96xf32>
    %c0_62 = arith.constant 0 : index
    %c0_63 = arith.constant 0 : index
    %c0_64 = arith.constant 0 : index
    %45 = vector.load %arg4[%c0_62, %c0_63, %c0_64] : memref<1x1x96xf32, #tpu.memory_space<vmem>>, vector<1x1x96xf32>
    %46 = vector.broadcast %45 : vector<1x1x96xf32> to vector<1x8x96xf32>
    %47 = arith.addf %44, %46 : vector<1x8x96xf32>
    %48 = vector.extract_strided_slice %47 {offsets = [0, 0, 0], sizes = [1, 8, 32], strides = [1, 1, 1]} : vector<1x8x96xf32> to vector<1x8x32xf32>
    %49 = math.tanh %48 : vector<1x8x32xf32>
    %50 = vector.extract_strided_slice %47 {offsets = [0, 0, 32], sizes = [1, 8, 32], strides = [1, 1, 1]} : vector<1x8x96xf32> to vector<1x8x32xf32>
    %51 = arith.negf %50 : vector<1x8x32xf32>
    %52 = math.exp %51 : vector<1x8x32xf32>
    %cst_65 = arith.constant 1.000000e+00 : f32
    %53 = vector.broadcast %cst_65 : f32 to vector<1x8x32xf32>
    %54 = arith.addf %53, %52 : vector<1x8x32xf32>
    %55 = arith.divf %53, %54 : vector<1x8x32xf32>
    %56 = vector.extract_strided_slice %47 {offsets = [0, 0, 64], sizes = [1, 8, 32], strides = [1, 1, 1]} : vector<1x8x96xf32> to vector<1x8x32xf32>
    %57 = arith.negf %56 : vector<1x8x32xf32>
    %58 = math.exp %57 : vector<1x8x32xf32>
    %cst_66 = arith.constant 1.000000e+00 : f32
    %59 = vector.broadcast %cst_66 : f32 to vector<1x8x32xf32>
    %60 = arith.addf %59, %58 : vector<1x8x32xf32>
    %61 = arith.divf %59, %60 : vector<1x8x32xf32>
    %cst_67 = arith.constant 1.000000e+00 : f32
    %62 = vector.broadcast %cst_67 : f32 to vector<1x8x32xf32>
    %63 = arith.subf %62, %55 : vector<1x8x32xf32>
    %64 = arith.mulf %63, %49 : vector<1x8x32xf32>
    %65 = tpu.iota {dimensions = array<i32: 1>} : vector<1x8x32xi32>
    %c1_i32 = arith.constant 1 : i32
    %66 = vector.broadcast %c1_i32 : i32 to vector<1x8x32xi32>
    %67 = arith.cmpi sge, %65, %66 : vector<1x8x32xi32>
    %c1_i32_68 = arith.constant 1 : i32
    %68 = tpu.dynamic_rotate %55 by %c1_i32_68 dim 1 : vector<1x8x32xf32>, i32 -> vector<1x8x32xf32>
    %cst_69 = arith.constant 1.000000e+00 : f32
    %69 = vector.broadcast %cst_69 : f32 to vector<1x8x32xf32>
    %70 = arith.select %67, %68, %69 : vector<1x8x32xi1>, vector<1x8x32xf32>
    %c1_i32_70 = arith.constant 1 : i32
    %71 = vector.broadcast %c1_i32_70 : i32 to vector<1x8x32xi32>
    %72 = arith.cmpi sge, %65, %71 : vector<1x8x32xi32>
    %c1_i32_71 = arith.constant 1 : i32
    %73 = tpu.dynamic_rotate %64 by %c1_i32_71 dim 1 : vector<1x8x32xf32>, i32 -> vector<1x8x32xf32>
    %cst_72 = arith.constant 0.000000e+00 : f32
    %74 = vector.broadcast %cst_72 : f32 to vector<1x8x32xf32>
    %75 = arith.select %72, %73, %74 : vector<1x8x32xi1>, vector<1x8x32xf32>
    %76 = arith.mulf %55, %75 : vector<1x8x32xf32>
    %77 = arith.addf %76, %64 : vector<1x8x32xf32>
    %78 = arith.mulf %55, %70 : vector<1x8x32xf32>
    %c2_i32 = arith.constant 2 : i32
    %79 = vector.broadcast %c2_i32 : i32 to vector<1x8x32xi32>
    %80 = arith.cmpi sge, %65, %79 : vector<1x8x32xi32>
    %c2_i32_73 = arith.constant 2 : i32
    %81 = tpu.dynamic_rotate %78 by %c2_i32_73 dim 1 : vector<1x8x32xf32>, i32 -> vector<1x8x32xf32>
    %cst_74 = arith.constant 1.000000e+00 : f32
    %82 = vector.broadcast %cst_74 : f32 to vector<1x8x32xf32>
    %83 = arith.select %80, %81, %82 : vector<1x8x32xi1>, vector<1x8x32xf32>
    %c2_i32_75 = arith.constant 2 : i32
    %84 = vector.broadcast %c2_i32_75 : i32 to vector<1x8x32xi32>
    %85 = arith.cmpi sge, %65, %84 : vector<1x8x32xi32>
    %c2_i32_76 = arith.constant 2 : i32
    %86 = tpu.dynamic_rotate %77 by %c2_i32_76 dim 1 : vector<1x8x32xf32>, i32 -> vector<1x8x32xf32>
    %cst_77 = arith.constant 0.000000e+00 : f32
    %87 = vector.broadcast %cst_77 : f32 to vector<1x8x32xf32>
    %88 = arith.select %85, %86, %87 : vector<1x8x32xi1>, vector<1x8x32xf32>
    %89 = arith.mulf %78, %88 : vector<1x8x32xf32>
    %90 = arith.addf %89, %77 : vector<1x8x32xf32>
    %91 = arith.mulf %78, %83 : vector<1x8x32xf32>
    %c4_i32 = arith.constant 4 : i32
    %92 = vector.broadcast %c4_i32 : i32 to vector<1x8x32xi32>
    %93 = arith.cmpi sge, %65, %92 : vector<1x8x32xi32>
    %c4_i32_78 = arith.constant 4 : i32
    %94 = tpu.dynamic_rotate %91 by %c4_i32_78 dim 1 : vector<1x8x32xf32>, i32 -> vector<1x8x32xf32>
    %cst_79 = arith.constant 1.000000e+00 : f32
    %95 = vector.broadcast %cst_79 : f32 to vector<1x8x32xf32>
    %96 = arith.select %93, %94, %95 : vector<1x8x32xi1>, vector<1x8x32xf32>
    %c4_i32_80 = arith.constant 4 : i32
    %97 = vector.broadcast %c4_i32_80 : i32 to vector<1x8x32xi32>
    %98 = arith.cmpi sge, %65, %97 : vector<1x8x32xi32>
    %c4_i32_81 = arith.constant 4 : i32
    %99 = tpu.dynamic_rotate %90 by %c4_i32_81 dim 1 : vector<1x8x32xf32>, i32 -> vector<1x8x32xf32>
    %cst_82 = arith.constant 0.000000e+00 : f32
    %100 = vector.broadcast %cst_82 : f32 to vector<1x8x32xf32>
    %101 = arith.select %98, %99, %100 : vector<1x8x32xi1>, vector<1x8x32xf32>
    %102 = arith.mulf %91, %101 : vector<1x8x32xf32>
    %103 = arith.addf %102, %90 : vector<1x8x32xf32>
    %104 = arith.mulf %91, %96 : vector<1x8x32xf32>
    %c0_83 = arith.constant 0 : index
    %c0_84 = arith.constant 0 : index
    %c0_85 = arith.constant 0 : index
    %105 = vector.load %arg8[%c0_83, %c0_84, %c0_85] : memref<1x1x32xf32, #tpu.memory_space<vmem>>, vector<1x1x32xf32>
    %106 = vector.broadcast %105 : vector<1x1x32xf32> to vector<1x8x32xf32>
    %107 = arith.mulf %104, %106 : vector<1x8x32xf32>
    %108 = arith.addf %107, %103 : vector<1x8x32xf32>
    %109 = vector.extract_strided_slice %108 {offsets = [0, 7, 0], sizes = [1, 1, 32], strides = [1, 1, 1]} : vector<1x8x32xf32> to vector<1x1x32xf32>
    %c0_86 = arith.constant 0 : index
    %c0_87 = arith.constant 0 : index
    %c0_88 = arith.constant 0 : index
    %110 = vector.load %arg8[%c0_86, %c0_87, %c0_88] : memref<1x1x32xf32, #tpu.memory_space<vmem>>, vector<1x1x32xf32>
    tpu.vector_store %arg8[%c0_86, %c0_87, %c0_88], %109 {strides = array<i32>} : memref<1x1x32xf32, #tpu.memory_space<vmem>>, vector<1x1x32xf32>,
    %111 = arith.mulf %61, %108 : vector<1x8x32xf32>
    %112 = arith.truncf %111 : vector<1x8x32xf32> to vector<1x8x32xbf16>
    %c0_89 = arith.constant 0 : index
    %c0_90 = arith.constant 0 : index
    %c0_91 = arith.constant 0 : index
    %113 = vector.load %arg5[%c0_89, %c0_90, %c0_91] : memref<1x8x32xbf16, #tpu.memory_space<vmem>>, vector<1x8x32xbf16>
    tpu.vector_store %arg5[%c0_89, %c0_90, %c0_91], %112 {strides = array<i32>} : memref<1x8x32xbf16, #tpu.memory_space<vmem>>, vector<1x8x32xbf16>,
    return
  }
  func.func @transform_0(%arg0: i32, %arg1: i32) -> (i32, i32, i32) {
    %c0_i32 = arith.constant 0 : i32
    %c0_i32_0 = arith.constant 0 : i32
    return %arg0, %arg1, %c0_i32 : i32, i32, i32
  }
  func.func @transform_1(%arg0: i32, %arg1: i32) -> (i32, i32, i32) {
    %c0_i32 = arith.constant 0 : i32
    %c0_i32_0 = arith.constant 0 : i32
    %c0_i32_1 = arith.constant 0 : i32
    %c0_i32_2 = arith.constant 0 : i32
    return %c0_i32, %c0_i32_0, %c0_i32_1 : i32, i32, i32
  }
  func.func @transform_2(%arg0: i32, %arg1: i32) -> (i32, i32, i32) {
    %c0_i32 = arith.constant 0 : i32
    %c0_i32_0 = arith.constant 0 : i32
    %c0_i32_1 = arith.constant 0 : i32
    %c0_i32_2 = arith.constant 0 : i32
    return %c0_i32, %c0_i32_0, %c0_i32_1 : i32, i32, i32
  }
  func.func @transform_3(%arg0: i32, %arg1: i32) -> (i32, i32, i32) {
    %c0_i32 = arith.constant 0 : i32
    %c0_i32_0 = arith.constant 0 : i32
    return %arg0, %arg1, %c0_i32 : i32, i32, i32
  }
}

module attributes {stable_mosaic.version = 11 : i64} {
  func.func @_head_kernel(%arg0: memref<2x80xf32, #tpu.memory_space<vmem>>, %arg1: memref<80x128xf32, #tpu.memory_space<vmem>>, %arg2: memref<1x128xf32, #tpu.memory_space<vmem>>, %arg3: memref<2x128xf32, #tpu.memory_space<vmem>>) attributes {dimension_semantics = [], scalar_prefetch = 0 : i64, scratch_operands = 0 : i64, tpu.core_type = #tpu.core_type<tc>} {
    %c0 = arith.constant 0 : index
    %c0_0 = arith.constant 0 : index
    %0 = vector.load %arg0[%c0, %c0_0] : memref<2x80xf32, #tpu.memory_space<vmem>>, vector<2x80xf32>
    %c0_1 = arith.constant 0 : index
    %c0_2 = arith.constant 0 : index
    %1 = vector.load %arg1[%c0_1, %c0_2] : memref<80x128xf32, #tpu.memory_space<vmem>>, vector<80x128xf32>
    %cst = arith.constant dense<0.000000e+00> : vector<2x128xf32>
    %2 = tpu.matmul %0, %1, %cst {dimension_numbers = #tpu.dot_dimension_numbers<[1], [0], [0], [1], [0, 0, 1, 1], [], []>} : vector<2x80xf32>, vector<80x128xf32>, vector<2x128xf32> -> vector<2x128xf32>
    %c0_3 = arith.constant 0 : index
    %c0_4 = arith.constant 0 : index
    %3 = vector.load %arg2[%c0_3, %c0_4] : memref<1x128xf32, #tpu.memory_space<vmem>>, vector<1x128xf32>
    %4 = vector.broadcast %3 : vector<1x128xf32> to vector<2x128xf32>
    %5 = arith.addf %2, %4 : vector<2x128xf32>
    %cst_5 = arith.constant dense<0xFF800000> : vector<2xf32>
    %6 = vector.multi_reduction <maximumf>, %5, %cst_5 [1] : vector<2x128xf32> to vector<2xf32>
    %7 = vector.shape_cast %6 : vector<2xf32> to vector<2x1xf32>
    %8 = vector.broadcast %7 : vector<2x1xf32> to vector<2x128xf32>
    %9 = arith.subf %5, %8 : vector<2x128xf32>
    %10 = math.exp %9 : vector<2x128xf32>
    %cst_6 = arith.constant dense<0.000000e+00> : vector<2xf32>
    %11 = vector.multi_reduction <add>, %10, %cst_6 [1] : vector<2x128xf32> to vector<2xf32>
    %12 = vector.shape_cast %11 : vector<2xf32> to vector<2x1xf32>
    %13 = math.log %12 : vector<2x1xf32>
    %14 = arith.addf %13, %7 : vector<2x1xf32>
    %15 = vector.broadcast %14 : vector<2x1xf32> to vector<2x128xf32>
    %16 = arith.subf %5, %15 : vector<2x128xf32>
    %c0_7 = arith.constant 0 : index
    %c0_8 = arith.constant 0 : index
    %17 = vector.load %arg3[%c0_7, %c0_8] : memref<2x128xf32, #tpu.memory_space<vmem>>, vector<2x128xf32>
    tpu.vector_store %arg3[%c0_7, %c0_8], %16 {strides = array<i32>} : memref<2x128xf32, #tpu.memory_space<vmem>>, vector<2x128xf32>,
    return
  }
}

</mosaic_0001>

<bundles_post_ra>
// kernel: qrnn_forward.3
= control target key start
LH: loop header
LB: loop body
LE: loop exit
PB: predicated region body
PF: predicated region fallthrough
CT: control target
= control target key end

     0   :  { %s724_s12 = smov 0   ;;  %s726_s13 = smov 0   ;;  %s818_s0 = inlined_call_operand.vmem [shape: bf16[2,8,16], index: 0, kind: input, shape index: {}]   ;;  %s819_s1 = inlined_call_operand.vmem [shape: bf16[3,16,96], index: 1, kind: input, shape index: {}]   ;;  %s820_s2 = inlined_call_operand.vmem [shape: f32[1,1,96], index: 2, kind: input, shape index: {}]   ;;  %s821_s3 = inlined_call_operand.vmem [shape: bf16[2,8,32], index: 3, kind: output, shape index: {}]  }
   0x1   :  { %s728_s14 = smov 0  }
   0x2 LB: > { %s25_s15 = sadd.s32 1, %s693_s13  ;;  %p593_p0 = scmp.ge.s32.totalorder %s697_s14, 1  ;;  %s697_s14 = sphi %s728_s14, %s13_s14   ;;  %s693_s13 = sphi %s726_s13, %s823_s13   ;;  %s689_s12 = sphi %s724_s12, %s822_s12  }
   0x3   : > { %p27_p1 = scmp.ge.s32.totalorder %s25_s15, 2  ;;  %p155_p2 = scmp.lt.s32.totalorder %s697_s14, 3 }
   0x5   : > { %s825_s15 = smov (%p27_p1, %s25_s15), 0  ;;  %p156_p3 = pnand %p593_p0, %p155_p2 }
   0x6   : > { %v666_v0 = vld [vmem:[%s819_s1] sm:$0xff] (!%p156_p3)   ;;  %v699_v1 = vmov (!%p156_p3), 0.0   ;;  %p183_p4 = scmp.lt.s32.totalorder (!%p156_p3), %s689_s12, 1  ;;  %v667_v2 = vld [vmem:[%s819_s1 + $0x8] sm:$0xff] (!%p156_p3)   ;;  %vm700_vm0 = vmmov (!%p156_p3), 0   ;;  %vm204_vm1 = vcmask (!%p156_p3), 779264   ;;  %v411_v43 = vlaneseq (!%p156_p3) }
   0x7   : > { %159 = sbr.rel (%p156_p3) target bundleno = 1340 (0x53c), region = 32  ;;  %619 = vmatprep.subr.bf16.mxu0 (!%p156_p3), %v699_v1  ;;  %625 = vmatprep.subr.bf16.mxu1 (!%p156_p3), %v699_v1  ;;  %vm206_vm2 = vcmask (!%p156_p3), 785408   ;;  %205 = vst.msk [vmem:[#allocation3] sm:$0x3] (!%p156_p3), %vm204_vm1, %v699_v1  ;;  %vm223_vm3 = vcmask (!%p156_p3), 130048   ;;  %v668_v3 = vld [vmem:[%s819_s1 + $0x10] sm:$0xff] (!%p156_p3)  }
   0x8   : > { %620 = vmatpush3.bf16.msra.mxu0 (!%p156_p3), %v666_v0  ;;  %621 = vmatprep.mubr.msk.bf16.mxu0 (!%p156_p3), %vm700_vm0, %v699_v1  ;;  %207 = vst.msk [vmem:[#allocation2] sm:$0xff] (!%p156_p3), %vm206_vm2, %v699_v1  ;;  %vm269_vm4 = vcmask (!%p156_p3), 783360   ;;  %vm328_vm5 = vcmask (!%p156_p3), 784384   ;;  %vm335_vm6 = vcmask (!%p156_p3), 778240   ;;  %v606_v32 = vld [vmem:[%s820_s2] ss:$0 sm:$0xff] (!%p156_p3) }
   0x9   : > { %626 = vmatpush3.bf16.msra.mxu1 (!%p156_p3), %v667_v2  ;;  %627 = vmatprep.mubr.msk.bf16.mxu1 (!%p156_p3), %vm700_vm0, %v699_v1  ;;  %s701_s28 = smov (!%p156_p3), 32   ;;  %s702_s29 = smov (!%p156_p3), 96   ;;  %v412_v44 = vshrl.u32 (!%p156_p3), %v411_v43, 7  ;;  %vm202_vm9 = vcmask (!%p156_p3), 253952   ;;  %vm500_vm11 = vcmask (!%p156_p3), 261127   ;;  %vm513_vm12 = vcmask (!%p156_p3), 257024  }
   0xa   : > { %631 = vmatprep.subr.bf16.mxu0 (!%p156_p3), %v699_v1  ;;  %203 = vst.msk [vmem:[#allocation4] sm:$0x1] (!%p156_p3), %vm202_vm9, %v699_v1  ;;  %s703_s30 = smov (!%p156_p3), 64  }
   0xb   : > { %vm413_vm7 = vcmp.ge.s32.totalorder (!%p156_p3), %v412_v44, 1  ;;  %vm437_vm8 = vcmp.ge.s32.totalorder (!%p156_p3), %v412_v44, 2  ;;  %vm461_vm10 = vcmp.ge.s32.totalorder (!%p156_p3), %v412_v44, 4 }
   0xe   : > { %s827_s12 = smov (!%p183_p4, %s689_s12), 1  ;;  %v209_v6 = vld [vmem:[#allocation3] sm:$0x3] }
   0xf   : > { %s594_s20 = sshll.u32 %s827_s12, 2  ;;  %v208_v5 = vld [vmem:[#allocation2] sm:$0x3]  ;;  %213 = vst.msk [vmem:[#allocation3] sm:$0x3] %vm204_vm1, %v699_v1 }
  0x10   : > { %s189_s25 = scalar_lea.vmem %s818_s0, %s594_s20  ;;  %v210_v7 = vadd.f32 %v209_v6, %v208_v5  ;;  %v267_v8 = vld [vmem:[#allocation2 + $0x2] sm:$0x3f]  ;;  %s196_s6 = scalar_lea.vmem %s821_s3, %s594_s20 }
  0x11   : > { %v214_v4 = vld [vmem:[%s189_s25] sm:$0xf] }
  0x12   : > { %622 = vmatmul.mubr.msk.bf16.vlgmr.msra.gmra.mrb[0].mxu0 %vm223_vm3, %v214_v4  ;;  %628 = vmatmul.mubr.msk.bf16.vlgmr.msra.gmra.mrb[0].mxu1 %vm223_vm3, %v214_v4  ;;  %212 = vst.msk [vmem:[#allocation2] sm:$0x3] %vm204_vm1, %v210_v7 }
  0x13   : > { %632 = vmatpush3.bf16.msra.mxu0 %v668_v3  ;;  %633 = vmatprep.mubr.msk.bf16.mxu0 %vm700_vm0, %v699_v1 }
  0x16   : > { %v271_v10 = vld [vmem:[#allocation3] sm:$0x3] }
  0x1a   : > { %634 = vmatmul.mubr.msk.bf16.vlgmr.msra.gmra.mrb[4].mxu0 %vm223_vm3, %v214_v4 }
  0xe5   : > { %v261_v9 = vpop.f32.mrb[0].mxu0  ;;  %v320_v11 = vpop.f32.mrb[0].mxu1 }
  0xe6   : > { %v268_v12 = vadd.f32 %v267_v8, %v261_v9  ;;  %v273_v13 = vrot.slane %v261_v9, 6  ;;  %v623_v14 = vpop.f32.mrb[1].mxu0  ;;  %v629_v15 = vpop.f32.mrb[1].mxu1  ;;  %v332_v22 = vrot.slane %v320_v11, 7 }
  0xe7   : > { %v264_v16 = vpop.f32.mrb[2].mxu0  ;;  %v323_v17 = vpop.f32.mrb[2].mxu1 }
  0xe8   : > { %270 = vst.msk [vmem:[#allocation2 + $0x2] sm:$0x3f] %vm269_vm4, %v268_v12  ;;  %v275_v18 = vadd.f32 %v273_v13, %v271_v10  ;;  %v624_v19 = vpop.f32.mrb[3].mxu0  ;;  %v630_v20 = vpop.f32.mrb[3].mxu1  ;;  %v608_v10 = vld [vmem:[#allocation4] ss:$0 sm:$0xff] }
  0xea   : > { %276 = vst.msk [vmem:[#allocation3] sm:$0x3] %vm204_vm1, %v275_v18 }
  0xed   : > { %v380_v21 = vpop.f32.mrb[4].mxu0 }
  0xee   : > { %v635_v23 = vpop.f32.mrb[5].mxu0 }
  0xef   : > { %v326_v24 = vld [vmem:[#allocation2 + $0x1] sm:$0x7f]  ;;  %v383_v25 = vpop.f32.mrb[6].mxu0 }
  0xf0   : > { %v327_v26 = vadd.f32 %v326_v24, %v320_v11  ;;  %v636_v27 = vpop.f32.mrb[7].mxu0 }
  0xf1   : > { %v330_v28 = vld [vmem:[#allocation3] sm:$0x1] }
  0xf2   : > { %329 = vst.msk [vmem:[#allocation2 + $0x1] sm:$0x7f] %vm328_vm5, %v327_v26  ;;  %v334_v29 = vadd.f32 %v332_v22, %v330_v28 }
  0xf4   : > { %336 = vst.msk [vmem:[#allocation3] sm:$0x1] %vm335_vm6, %v334_v29 }
  0xf9   : > { %v386_v30 = vld [vmem:[#allocation2] sm:$0xff] }
  0xfa   : > { %v387_v31 = vadd.f32 %v386_v30, %v380_v21 }
  0xfc   : > { %388 = vst.msk [vmem:[#allocation2] sm:$0xff] %vm206_vm2, %v387_v31 }
 0x103   : > { %v389_v33 = vld [vmem:[#allocation2] sm:$0xff] }
 0x104   : > { %v397_v34 = vadd.f32 %v606_v32, %v389_v33 }
 0x106   : > { %669 = vtanh.f32 %v397_v34  ;;  %v607_v35 = vmul.f32 -1.442695, %v397_v34 }
 0x108   : > { %671 = vpow2.f32 %v607_v35 }
 0x110   : > { %v670_v36 = vpop.eup %669 }
 0x111   : > { %407 = vrot.lane.b32.xlu0 %v670_v36, %s701_s28 }
 0x112   : > { %v672_v37 = vpop.eup %671 }
 0x113   : > { %v402_v38 = vadd.f32 1.0, %v672_v37 }
 0x115   : > { %673 = vrcp.f32 %v402_v38 }
 0x11f   : > { %v781_v39 = vpop.eup %673 }
 0x120   : > { %415 = vrot.lane.b32.xlu1 %v781_v39, %s702_s29  ;;  %v405_v40 = vsub.f32 1.0, %v781_v39 }
 0x183   : > { %v408_v41 = vpop.permute.xlu0 %407 }
 0x184   : > { %v410_v42 = vmul.f32 %v408_v41, %v405_v40 }
 0x186   : > { %421 = vrot.lane.b32.xlu0 %v410_v42, %s702_s29 }
 0x192   : > { %v416_v45 = vpop.permute.xlu1 %415 }
 0x193   : > { %v418_v46 = vrot.slane %v416_v45, 7 }
 0x195   : > { %v419_v47 = vsel %vm413_vm7, %v418_v46, 1.0 }
 0x196   : > { %433 = vrot.lane.b32.xlu0 %v419_v47, %s701_s28 }
 0x1f8   : > { %v422_v48 = vpop.permute.xlu0 %421 }
 0x1f9   : > { %v424_v49 = vrot.slane %v422_v48, 7 }
 0x1fb   : > { %v425_v50 = vsel %vm413_vm7, %v424_v49, 0.0 }
 0x1fc   : > { %427 = vrot.lane.b32.xlu1 %v425_v50, %s701_s28 }
 0x208   : > { %v434_v51 = vpop.permute.xlu0 %433 }
 0x209   : > { %v436_v52 = vmul.f32 %v781_v39, %v434_v51 }
 0x20b   : > { %439 = vrot.lane.b32.xlu0 %v436_v52, %s702_s29 }
 0x26e   : > { %v428_v53 = vpop.permute.xlu1 %427 }
 0x26f   : > { %v430_v54 = vmul.f32 %v781_v39, %v428_v53 }
 0x271   : > { %v431_v55 = vadd.f32 %v430_v54, %v410_v42 }
 0x273   : > { %445 = vrot.lane.b32.xlu1 %v431_v55, %s702_s29 }
 0x27d   : > { %v440_v56 = vpop.permute.xlu0 %439 }
 0x27e   : > { %v442_v57 = vrot.slane %v440_v56, 6 }
 0x280   : > { %v443_v58 = vsel %vm437_vm8, %v442_v57, 1.0 }
 0x281   : > { %457 = vrot.lane.b32.xlu0 %v443_v58, %s701_s28 }
 0x2e5   : > { %v446_v59 = vpop.permute.xlu1 %445 }
 0x2e6   : > { %v448_v60 = vrot.slane %v446_v59, 6 }
 0x2e8   : > { %v449_v61 = vsel %vm437_vm8, %v448_v60, 0.0 }
 0x2e9   : > { %451 = vrot.lane.b32.xlu1 %v449_v61, %s701_s28 }
 0x2f3   : > { %v458_v62 = vpop.permute.xlu0 %457 }
 0x2f4   : > { %v460_v63 = vmul.f32 %v458_v62, %v436_v52 }
 0x2f6   : > { %463 = vrot.lane.b32.xlu1 %v460_v63, %s702_s29 }
 0x35b   : > { %v452_v0 = vpop.permute.xlu1 %451 }
 0x35c   : > { %v454_v2 = vmul.f32 %v452_v0, %v436_v52 }
 0x35e   : > { %v455_v3 = vadd.f32 %v454_v2, %v431_v55 }
 0x360   : > { %469 = vrot.lane.b32.xlu0 %v455_v3, %s702_s29 }
 0x368   : > { %v464_v4 = vpop.permute.xlu1 %463 }
 0x369   : > { %v466_v5 = vrot.slane %v464_v4, 4 }
 0x36b   : > { %v467_v6 = vsel %vm461_vm10, %v466_v5, 1.0 }
 0x36c   : > { %481 = vrot.lane.b32.xlu0 %v467_v6, %s701_s28 }
 0x3d2   : > { %v470_v7 = vpop.permute.xlu0 %469 }
 0x3d3   : > { %v472_v8 = vrot.slane %v470_v7, 4 }
 0x3d5   : > { %v473_v9 = vsel %vm461_vm10, %v472_v8, 0.0 }
 0x3d6   : > { %475 = vrot.lane.b32.xlu1 %v473_v9, %s701_s28 }
 0x3da   : > { %491 = vrot.lane.b32.xlu1 %v608_v10, %s701_s28 }
 0x3de   : > { %v482_v1 = vpop.permute.xlu0 %481 }
 0x3df   : > { %v484_v13 = vmul.f32 %v482_v1, %v460_v63 }
 0x448   : > { %v476_v11 = vpop.permute.xlu1 %475 }
 0x449   : > { %v478_v12 = vmul.f32 %v476_v11, %v460_v63 }
 0x44b   : > { %v479_v15 = vadd.f32 %v478_v12, %v455_v3 }
 0x44c   : > { %v492_v14 = vpop.permute.xlu1 %491 }
 0x44d   : > { %v494_v16 = vmul.f32 %v492_v14, %v484_v13 }
 0x44f   : > { %v495_v17 = vadd.f32 %v494_v16, %v479_v15 }
 0x451   : > { %497 = vrot.lane.b32.xlu1 %v495_v17, %s702_s29  ;;  %502 = vrot.lane.b32.xlu0 %v495_v17, %s701_s28 }
 0x4c3   : > { %v498_v18 = vpop.permute.xlu1 %497  ;;  %v503_v19 = vpop.permute.xlu0 %502 }
 0x4c4   : > { %501 = vst.msk [vmem:[#allocation4 - $0x7] sm:$0x80] %vm500_vm11, %v498_v18  ;;  %v505_v20 = vmul.f32 %v781_v39, %v503_v19 }
 0x4c6   : > { %v612_v21 = vpack.c.bf16 %v505_v20, %v505_v20 }
 0x4c8   : > { %510 = vrot.lane.b32.xlu0 %v612_v21, %s703_s30 }
 0x53a   : > { %v511_v22 = vpop.permute.xlu0 %510 }
 0x53b   : > { %514 = vst.msk [vmem:[%s196_s6] sm:$0xf] %vm513_vm12, %v511_v22 }
 0x53c PF: > { %s13_s14 = sadd.s32 1, %s697_s14   ;;  %s822_s12 = smov %s693_s13 }
 0x53d   : > { %p10_p5 = scmp.ge.s32.totalorder %s13_s14, 4   ;;  %s823_s13 = smov %s825_s15 }
 0x53f   :  { %12 = sbr.rel (!%p10_p5) target bundleno = 2 (0x2), region = 68 }

// kernel: qrnn_forward.5
= control target key start
LH: loop header
LB: loop body
LE: loop exit
PB: predicated region body
PF: predicated region fallthrough
CT: control target
= control target key end

     0   :  { %v219_v3 = vmov 0.0|0.0   ;;  %vm220_vm0 = vmmov 0   ;;  %v221_v6 = vmov 0.0   ;;  %s291_s0 = inlined_call_operand.vmem [shape: f32[2,80], index: 0, kind: input, shape index: {}]   ;;  %s292_s1 = inlined_call_operand.vmem [shape: f32[80,128], index: 1, kind: input, shape index: {}]   ;;  %s293_s2 = inlined_call_operand.vmem [shape: f32[1,128], index: 2, kind: input, shape index: {}]   ;;  %s294_s3 = inlined_call_operand.hbm [shape: f32[2,128], index: 3, kind: output, shape index: {}]  }
   0x1   :  { %v16_v0 = vld [vmem:[%s292_s1] sm:$0xff]  ;;  %v17_v1 = vld [vmem:[%s292_s1 + $0x8] sm:$0xff]  ;;  %v18_v2 = vld [vmem:[%s292_s1 + $0x10] sm:$0xff]  ;;  %172 = vmatprep.subr.bf16.mxu0 %v219_v3  ;;  %169 = vmatprep.mubr.msk.f32.mxu0 %vm220_vm0, %v221_v6 }
   0x2   :  { %v173_v4 = vpack.c.bf16 %v17_v1, %v16_v0  ;;  %v19_v5 = vld [vmem:[%s292_s1 + $0x18] sm:$0xff]  ;;  %v20_v8 = vld [vmem:[%s292_s1 + $0x20] sm:$0xff]  ;;  %v21_v9 = vld [vmem:[%s292_s1 + $0x28] sm:$0xff] }
   0x3   :  { %v176_v7 = vpack.c.bf16 %v19_v5, %v18_v2 }
   0x4   :  { %174 = vmatpush3.bf16.msra.mxu0 %v173_v4 }
   0x5   :  { %175 = vmatprep.subr.bf16.mxu0 %v219_v3 }
   0x6   :  { %8 = vsyncpa [#allocation3], 0  ;;  %v179_v10 = vpack.c.bf16 %v21_v9, %v20_v8  ;;  %v22_v11 = vld [vmem:[%s292_s1 + $0x30] sm:$0xff]  ;;  %v23_v12 = vld [vmem:[%s292_s1 + $0x38] sm:$0xff]  ;;  %vm33_vm1 = vcmask 654336   ;;  %vm107_vm2 = vcmask 1041408  }
   0x7   :  { %v182_v13 = vpack.c.bf16 %v23_v12, %v22_v11  ;;  %v24_v14 = vld [vmem:[%s292_s1 + $0x40] sm:$0xff]  ;;  %v25_v15 = vld [vmem:[%s292_s1 + $0x48] sm:$0xff] }
   0x8   :  { %177 = vmatpush3.bf16.msra.mxu0 %v176_v7  ;;  %v185_v16 = vpack.c.bf16 %v25_v15, %v24_v14  ;;  %v15_v17 = vld [vmem:[%s291_s0] sm:$0x3]  ;;  %s222_s0 = smov [#allocation2]  }
   0x9   :  { %178 = vmatprep.subr.bf16.mxu0 %v219_v3  ;;  %v136_v18 = vld [vmem:[%s293_s2] ss:$0 sm:$0xff]  ;;  %s128_s1 = sshll.u32 %s222_s0, 4  ;;  %s129_s1 = int_to_ptr.vmem [resolvable:$true] %s128_s1 }
   0xa   :  { %s195_s2 = scalar_lea.vmem %s129_s1, 32  ;;  %p200_p1 = scmp.lt.s32.totalorder %s129_s1, %s129_s1 }
   0xb   :  { %p196_p0 = scmp.ne.s32.totalorder %s129_s1, %s195_s2  ;;  %p201_p2 = scmp.lt.s32.totalorder %s195_s2, %s195_s2 }
   0xc   :  { %180 = vmatpush3.bf16.msra.mxu0 %v179_v10 }
   0xd   :  { %181 = vmatprep.subr.bf16.mxu0 %v219_v3  ;;  %p202_p3 = por %p201_p2, %p200_p1 }
   0xf   :  { %p203_p4 = pnand %p202_p3, %p196_p0 }
  0x10   :  { %183 = vmatpush3.bf16.msra.mxu0 %v182_v13 }
  0x11   :  { %184 = vmatprep.subr.bf16.mxu0 %v219_v3 }
  0x14   :  { %186 = vmatpush3.bf16.msra.mxu0 %v185_v16 }
  0x17   :  { %170 = vmatmul.mubr.msk.f32.vlgmr.msra.gmra.mrb[0].mxu0 %vm33_vm1, %v15_v17 }
  0xea   :  { %v103_v19 = vpop.f32.mrb[0].mxu0 }
  0xeb   :  { %v104_v20 = vadd.f32 %v136_v18, %v103_v19  ;;  %v171_v21 = vpop.f32.mrb[1].mxu0 }
  0xed   :  { %v108_v22 = vsel %vm107_vm2, %v104_v20, -inf }
  0xee   :  { %109 = vmax.xlane.f32.xlu0 %v108_v22 }
 0x17b   :  { %v110_v23 = vpop.xlane.xlu0 %109 }
 0x17c   :  { %v111_v24 = vsub.f32 %v104_v20, %v110_v23 }
 0x17e   :  { %v112_v25 = vmul.f32 1.442695, %v111_v24 }
 0x180   :  { %191 = vpow2.f32 %v112_v25 }
 0x18a   :  { %v192_v26 = vpop.eup %191 }
 0x18b   :  { %v114_v27 = vsel %vm107_vm2, %v192_v26, 0.0 }
 0x18c   :  { %115 = vadd.xlane.f32.xlu0 %v114_v27 }
 0x219   :  { %v116_v28 = vpop.xlane.xlu0 %115 }
 0x21a   :  { %193 = vlog2.f32 %v116_v28 }
 0x224   :  { %v194_v29 = vpop.eup %193 }
 0x225   :  { %v118_v30 = vmul.f32 0.6931472, %v194_v29 }
 0x227   :  { %v119_v31 = vadd.f32 %v118_v30, %v110_v23 }
 0x229   :  { %v120_v32 = vsub.f32 %v104_v20, %v119_v31 }
 0x22b   :  { %121 = vst [vmem:[#allocation2] sm:$0x3] %v120_v32 }
 0x22c   :  { %206 = shalt.err (!%p203_p4)
}
 0x22d   :  { %s207_s11 = scalar_lea.hbm %s294_s3, 32 }
 0x22e   :  { %p208_p5 = scmp.ne.s32.totalorder %s294_s3, %s207_s11  ;;  %p211_p6 = scmp.lt.u32.totalorder %s207_s11, %s294_s3 }
 0x230   :  { %p213_p7 = pnand %p211_p6, %p208_p5 }
 0x232   :  { %216 = shalt.err (!%p213_p7)
}
 0x233   :  { %131 = dma.vmem_to_hbm [thread:$0]  %s129_s1, 32, %s294_s3, [#allocation3]  }
 0x234   :  { %217 = dma.done.wait [#allocation3], 32  }
 0x235   :  { %218 = vsyncadd [#allocation3], 4294967264 }
 0x236   :  { %135 = vsyncpa [#allocation3], 1 }

// kernel: qrnn_forward.4
= control target key start
LH: loop header
LB: loop body
LE: loop exit
PB: predicated region body
PF: predicated region fallthrough
CT: control target
= control target key end

     0   :  { %s897_s15 = smov 0   ;;  %s899_s16 = smov 0   ;;  %s1017_s0 = inlined_call_operand.vmem [shape: bf16[2,8,32], index: 0, kind: input, shape index: {}]   ;;  %s1018_s1 = inlined_call_operand.vmem [shape: bf16[2,8,16], index: 1, kind: input, shape index: {}]   ;;  %s1019_s2 = inlined_call_operand.vmem [shape: bf16[3,48,96], index: 2, kind: input, shape index: {}]   ;;  %s1020_s3 = inlined_call_operand.vmem [shape: f32[1,1,96], index: 3, kind: input, shape index: {}]   ;;  %s1021_s4 = inlined_call_operand.vmem [shape: bf16[2,8,32], index: 4, kind: output, shape index: {}]  }
   0x1   :  { %s901_s17 = smov 0  }
   0x2 LB: > { %s26_s18 = sadd.s32 1, %s861_s16  ;;  %p720_p0 = scmp.ge.s32.totalorder %s865_s17, 1  ;;  %s865_s17 = sphi %s901_s17, %s14_s17   ;;  %s861_s16 = sphi %s899_s16, %s1023_s16   ;;  %s857_s15 = sphi %s897_s15, %s1022_s15  }
   0x3   : > { %p28_p1 = scmp.ge.s32.totalorder %s26_s18, 2  ;;  %p194_p2 = scmp.lt.s32.totalorder %s865_s17, 3 }
   0x5   : > { %s1025_s18 = smov (%p28_p1, %s26_s18), 0  ;;  %p195_p3 = pnand %p720_p0, %p194_p2 }
   0x6   : > { %p231_p4 = scmp.lt.s32.totalorder (!%p195_p3), %s857_s15, 1  ;;  %v828_v0 = vld [vmem:[%s1019_s2] sm:$0xff] (!%p195_p3)   ;;  %v867_v1 = vmov (!%p195_p3), 0.0   ;;  %v829_v2 = vld [vmem:[%s1019_s2 + $0x18] sm:$0xff] (!%p195_p3)   ;;  %v830_v3 = vld [vmem:[%s1019_s2 + $0x8] sm:$0xff] (!%p195_p3)   ;;  %vm868_vm0 = vmmov (!%p195_p3), 0   ;;  %v523_v52 = vlaneseq (!%p195_p3) }
   0x7   : > { %198 = sbr.rel (%p195_p3) target bundleno = 1456 (0x5b0), region = 36  ;;  %768 = vmatprep.subr.bf16.mxu0 (!%p195_p3), %v867_v1  ;;  %778 = vmatprep.subr.bf16.mxu1 (!%p195_p3), %v867_v1  ;;  %v831_v4 = vld [vmem:[%s1019_s2 + $0x20] sm:$0xff] (!%p195_p3)   ;;  %v832_v6 = vld [vmem:[%s1019_s2 + $0x10] sm:$0xff] (!%p195_p3)   ;;  %s869_s7 = smov (!%p195_p3), 32   ;;  %v833_v7 = vld [vmem:[%s1019_s2 + $0x28] sm:$0xff] (!%p195_p3)   ;;  %vm259_vm1 = vcmask (!%p195_p3), 779264  }
   0x8   : > { %769 = vmatpush3.bf16.msra.mxu0 (!%p195_p3), %v828_v0  ;;  %779 = vmatpush3.bf16.msra.mxu1 (!%p195_p3), %v829_v2  ;;  %260 = vst.msk [vmem:[#allocation3] sm:$0x3] (!%p195_p3), %vm259_vm1, %v867_v1  ;;  %vm261_vm2 = vcmask (!%p195_p3), 785408   ;;  %vm276_vm3 = vcmask (!%p195_p3), 261120   ;;  %vm304_vm4 = vcmask (!%p195_p3), 392192   ;;  %v834_v12 = vld [vmem:[%s1019_s2 + $0x30] sm:$0xff] (!%p195_p3)  }
   0x9   : > { %770 = vmatprep.subr.bf16.mxu0 (!%p195_p3), %v867_v1  ;;  %780 = vmatprep.subr.bf16.mxu1 (!%p195_p3), %v867_v1  ;;  %262 = vst.msk [vmem:[#allocation2] sm:$0xff] (!%p195_p3), %vm261_vm2, %v867_v1  ;;  %v835_v15 = vld [vmem:[%s1019_s2 + $0x38] sm:$0xff] (!%p195_p3)   ;;  %v836_v16 = vld [vmem:[%s1019_s2 + $0x40] sm:$0xff] (!%p195_p3)   ;;  %vm349_vm5 = vcmask (!%p195_p3), 783360   ;;  %vm424_vm6 = vcmask (!%p195_p3), 784384   ;;  %vm431_vm7 = vcmask (!%p195_p3), 778240  }
   0xa   : > { %774 = vmatprep.mubr.msk.bf16.mxu0 (!%p195_p3), %vm868_vm0, %v867_v1  ;;  %784 = vmatprep.mubr.msk.bf16.mxu1 (!%p195_p3), %vm868_vm0, %v867_v1  ;;  %v749_v41 = vld [vmem:[%s1020_s3] ss:$0 sm:$0xff] (!%p195_p3)  ;;  %s870_s24 = smov (!%p195_p3), 96   ;;  %v524_v53 = vshrl.u32 (!%p195_p3), %v523_v52, 7  ;;  %vm257_vm10 = vcmask (!%p195_p3), 253952   ;;  %vm612_vm12 = vcmask (!%p195_p3), 261127  }
   0xb   : > { %258 = vst.msk [vmem:[#allocation4] sm:$0x1] (!%p195_p3), %vm257_vm10, %v867_v1  ;;  %s871_s26 = smov (!%p195_p3), 64   ;;  %vm625_vm13 = vcmask (!%p195_p3), 257024  }
   0xc   : > { %771 = vmatpush3.bf16.msra.mxu0 (!%p195_p3), %v830_v3  ;;  %781 = vmatpush3.bf16.msra.mxu1 (!%p195_p3), %v831_v4  ;;  %vm525_vm8 = vcmp.ge.s32.totalorder (!%p195_p3), %v524_v53, 1  ;;  %vm549_vm9 = vcmp.ge.s32.totalorder (!%p195_p3), %v524_v53, 2  ;;  %vm573_vm11 = vcmp.ge.s32.totalorder (!%p195_p3), %v524_v53, 4 }
   0xd   : > { %772 = vmatprep.subr.bf16.mxu0 (!%p195_p3), %v867_v1  ;;  %782 = vmatprep.subr.bf16.mxu1 (!%p195_p3), %v867_v1 }
   0xe   : > { %s1027_s15 = smov (!%p231_p4, %s857_s15), 1 }
   0xf   : > { %s927_s25 = sshll.u32 %s1027_s15, 2  ;;  %v264_v8 = vld [vmem:[#allocation3] sm:$0x3] }
  0x10   : > { %s244_s30 = scalar_lea.vmem %s1018_s1, %s927_s25  ;;  %773 = vmatpush3.bf16.msra.mxu0 %v832_v6  ;;  %783 = vmatpush3.bf16.msra.mxu1 %v833_v7  ;;  %v263_v9 = vld [vmem:[#allocation2] sm:$0x3]  ;;  %268 = vst.msk [vmem:[#allocation3] sm:$0x3] %vm259_vm1, %v867_v1  ;;  %s237_s12 = scalar_lea.vmem %s1017_s0, %s927_s25  ;;  %v347_v17 = vld [vmem:[#allocation2 + $0x2] sm:$0x3f] }
  0x11   : > { %v827_v5 = vld [vmem:[%s244_s30] ss:$0 sps:$4 sm:$0xff]   ;;  %788 = vmatprep.subr.bf16.mxu0 %v867_v1  ;;  %v265_v10 = vadd.f32 %v264_v8, %v263_v9  ;;  %s251_s29 = scalar_lea.vmem %s1021_s4, %s927_s25 }
  0x12   : > { %274 = vrot.lane.b32.xlu0 %v827_v5, %s869_s7  ;;  %v269_v11 = vld [vmem:[%s237_s12] sm:$0xf] }
  0x13   : > { %267 = vst.msk [vmem:[#allocation2] sm:$0x3] %vm259_vm1, %v265_v10 }
  0x17   : > { %v351_v19 = vld [vmem:[#allocation3] sm:$0x3] }
  0x84   : > { %v275_v13 = vpop.permute.xlu0 %274 }
  0x85   : > { %v279_v14 = vsel %vm276_vm3, %v269_v11, %v275_v13 }
  0x86   : > { %775 = vmatmul.mubr.msk.bf16.vlgmr.msra.gmra.mrb[0].mxu0 %vm304_vm4, %v279_v14  ;;  %785 = vmatmul.mubr.msk.bf16.vlgmr.msra.gmra.mrb[0].mxu1 %vm304_vm4, %v279_v14 }
  0x87   : > { %789 = vmatpush3.bf16.msra.mxu0 %v834_v12  ;;  %794 = vmatprep.mubr.msk.bf16.mxu0 %vm868_vm0, %v867_v1 }
  0x88   : > { %790 = vmatprep.subr.bf16.mxu0 %v867_v1 }
  0x8b   : > { %791 = vmatpush3.bf16.msra.mxu0 %v835_v15 }
  0x8c   : > { %792 = vmatprep.subr.bf16.mxu0 %v867_v1  ;;  %v751_v1 = vld [vmem:[#allocation4] ss:$0 sm:$0xff] }
  0x8f   : > { %793 = vmatpush3.bf16.msra.mxu0 %v836_v16 }
  0x92   : > { %795 = vmatmul.mubr.msk.bf16.vlgmr.msra.gmra.mrb[4].mxu0 %vm304_vm4, %v279_v14 }
 0x159   : > { %v341_v18 = vpop.f32.mrb[0].mxu0  ;;  %v416_v20 = vpop.f32.mrb[0].mxu1 }
 0x15a   : > { %v348_v21 = vadd.f32 %v347_v17, %v341_v18  ;;  %v353_v22 = vrot.slane %v341_v18, 6  ;;  %v776_v23 = vpop.f32.mrb[1].mxu0  ;;  %v786_v24 = vpop.f32.mrb[1].mxu1  ;;  %v428_v32 = vrot.slane %v416_v20, 7 }
 0x15b   : > { %v344_v25 = vpop.f32.mrb[2].mxu0  ;;  %v419_v26 = vpop.f32.mrb[2].mxu1 }
 0x15c   : > { %350 = vst.msk [vmem:[#allocation2 + $0x2] sm:$0x3f] %vm349_vm5, %v348_v21  ;;  %v355_v27 = vadd.f32 %v353_v22, %v351_v19  ;;  %v777_v28 = vpop.f32.mrb[3].mxu0  ;;  %v787_v29 = vpop.f32.mrb[3].mxu1 }
 0x15e   : > { %356 = vst.msk [vmem:[#allocation3] sm:$0x3] %vm259_vm1, %v355_v27 }
 0x163   : > { %v422_v30 = vld [vmem:[#allocation2 + $0x1] sm:$0x7f] }
 0x164   : > { %v423_v31 = vadd.f32 %v422_v30, %v416_v20 }
 0x165   : > { %v426_v33 = vld [vmem:[#allocation3] sm:$0x1]  ;;  %v492_v34 = vpop.f32.mrb[4].mxu0 }
 0x166   : > { %425 = vst.msk [vmem:[#allocation2 + $0x1] sm:$0x7f] %vm424_vm6, %v423_v31  ;;  %v430_v35 = vadd.f32 %v428_v32, %v426_v33  ;;  %v796_v36 = vpop.f32.mrb[5].mxu0 }
 0x167   : > { %v495_v37 = vpop.f32.mrb[6].mxu0 }
 0x168   : > { %432 = vst.msk [vmem:[#allocation3] sm:$0x1] %vm431_vm7, %v430_v35  ;;  %v797_v38 = vpop.f32.mrb[7].mxu0 }
 0x16d   : > { %v498_v39 = vld [vmem:[#allocation2] sm:$0xff] }
 0x16e   : > { %v499_v40 = vadd.f32 %v498_v39, %v492_v34 }
 0x170   : > { %500 = vst.msk [vmem:[#allocation2] sm:$0xff] %vm261_vm2, %v499_v40 }
 0x177   : > { %v501_v42 = vld [vmem:[#allocation2] sm:$0xff] }
 0x178   : > { %v509_v43 = vadd.f32 %v749_v41, %v501_v42 }
 0x17a   : > { %837 = vtanh.f32 %v509_v43  ;;  %v750_v45 = vmul.f32 -1.442695, %v509_v43 }
 0x17c   : > { %839 = vpow2.f32 %v750_v45 }
 0x184   : > { %v838_v44 = vpop.eup %837 }
 0x185   : > { %519 = vrot.lane.b32.xlu0 %v838_v44, %s869_s7 }
 0x186   : > { %v840_v46 = vpop.eup %839 }
 0x187   : > { %v514_v47 = vadd.f32 1.0, %v840_v46 }
 0x189   : > { %841 = vrcp.f32 %v514_v47 }
 0x193   : > { %v981_v48 = vpop.eup %841 }
 0x194   : > { %v517_v49 = vsub.f32 1.0, %v981_v48 }
 0x1f7   : > { %v520_v50 = vpop.permute.xlu0 %519 }
 0x1f8   : > { %v522_v51 = vmul.f32 %v520_v50, %v517_v49 }
 0x1fa   : > { %533 = vrot.lane.b32.xlu1 %v522_v51, %s870_s24 }
 0x1fe   : > { %527 = vrot.lane.b32.xlu1 %v981_v48, %s870_s24 }
 0x26c   : > { %v534_v54 = vpop.permute.xlu1 %533 }
 0x26d   : > { %v536_v55 = vrot.slane %v534_v54, 7 }
 0x26f   : > { %v537_v56 = vsel %vm525_vm8, %v536_v55, 0.0 }
 0x270   : > { %539 = vrot.lane.b32.xlu0 %v537_v56, %s869_s7  ;;  %v528_v57 = vpop.permute.xlu1 %527 }
 0x271   : > { %v530_v58 = vrot.slane %v528_v57, 7 }
 0x273   : > { %v531_v59 = vsel %vm525_vm8, %v530_v58, 1.0 }
 0x274   : > { %545 = vrot.lane.b32.xlu1 %v531_v59, %s869_s7 }
 0x2e2   : > { %v540_v60 = vpop.permute.xlu0 %539 }
 0x2e3   : > { %v542_v61 = vmul.f32 %v981_v48, %v540_v60 }
 0x2e5   : > { %v543_v62 = vadd.f32 %v542_v61, %v522_v51 }
 0x2e6   : > { %v546_v63 = vpop.permute.xlu1 %545 }
 0x2e7   : > { %v548_v0 = vmul.f32 %v981_v48, %v546_v63  ;;  %557 = vrot.lane.b32.xlu0 %v543_v62, %s870_s24 }
 0x2e9   : > { %551 = vrot.lane.b32.xlu1 %v548_v0, %s870_s24 }
 0x359   : > { %v558_v2 = vpop.permute.xlu0 %557 }
 0x35a   : > { %v560_v3 = vrot.slane %v558_v2, 6 }
 0x35b   : > { %v552_v4 = vpop.permute.xlu1 %551 }
 0x35c   : > { %v554_v5 = vrot.slane %v552_v4, 6  ;;  %v561_v6 = vsel %vm549_vm9, %v560_v3, 0.0 }
 0x35d   : > { %563 = vrot.lane.b32.xlu0 %v561_v6, %s869_s7 }
 0x35e   : > { %v555_v7 = vsel %vm549_vm9, %v554_v5, 1.0 }
 0x35f   : > { %569 = vrot.lane.b32.xlu1 %v555_v7, %s869_s7 }
 0x3cf   : > { %v564_v8 = vpop.permute.xlu0 %563 }
 0x3d0   : > { %v566_v9 = vmul.f32 %v564_v8, %v548_v0 }
 0x3d1   : > { %v570_v10 = vpop.permute.xlu1 %569 }
 0x3d2   : > { %v567_v11 = vadd.f32 %v566_v9, %v543_v62  ;;  %v572_v12 = vmul.f32 %v570_v10, %v548_v0 }
 0x3d4   : > { %575 = vrot.lane.b32.xlu0 %v572_v12, %s870_s24  ;;  %581 = vrot.lane.b32.xlu1 %v567_v11, %s870_s24 }
 0x446   : > { %v576_v13 = vpop.permute.xlu0 %575  ;;  %v582_v14 = vpop.permute.xlu1 %581 }
 0x447   : > { %v578_v15 = vrot.slane %v576_v13, 4  ;;  %v584_v16 = vrot.slane %v582_v14, 4 }
 0x449   : > { %v579_v17 = vsel %vm573_vm11, %v578_v15, 1.0  ;;  %v585_v18 = vsel %vm573_vm11, %v584_v16, 0.0 }
 0x44a   : > { %593 = vrot.lane.b32.xlu1 %v579_v17, %s869_s7  ;;  %587 = vrot.lane.b32.xlu0 %v585_v18, %s869_s7 }
 0x44e   : > { %603 = vrot.lane.b32.xlu0 %v751_v1, %s869_s7 }
 0x4bc   : > { %v588_v19 = vpop.permute.xlu0 %587  ;;  %v594_v20 = vpop.permute.xlu1 %593 }
 0x4bd   : > { %v590_v21 = vmul.f32 %v588_v19, %v572_v12  ;;  %v596_v22 = vmul.f32 %v594_v20, %v572_v12 }
 0x4bf   : > { %v591_v24 = vadd.f32 %v590_v21, %v567_v11 }
 0x4c0   : > { %v604_v23 = vpop.permute.xlu0 %603 }
 0x4c1   : > { %v606_v25 = vmul.f32 %v604_v23, %v596_v22 }
 0x4c3   : > { %v607_v26 = vadd.f32 %v606_v25, %v591_v24 }
 0x4c5   : > { %609 = vrot.lane.b32.xlu0 %v607_v26, %s870_s24  ;;  %614 = vrot.lane.b32.xlu1 %v607_v26, %s869_s7 }
 0x537   : > { %v610_v27 = vpop.permute.xlu0 %609  ;;  %v615_v28 = vpop.permute.xlu1 %614 }
 0x538   : > { %613 = vst.msk [vmem:[#allocation4 - $0x7] sm:$0x80] %vm612_vm12, %v610_v27  ;;  %v617_v29 = vmul.f32 %v981_v48, %v615_v28 }
 0x53a   : > { %v755_v30 = vpack.c.bf16 %v617_v29, %v617_v29 }
 0x53c   : > { %622 = vrot.lane.b32.xlu1 %v755_v30, %s871_s26 }
 0x5ae   : > { %v623_v31 = vpop.permute.xlu1 %622 }
 0x5af   : > { %626 = vst.msk [vmem:[%s251_s29] sm:$0xf] %vm625_vm13, %v623_v31 }
 0x5b0 PF: > { %s14_s17 = sadd.s32 1, %s865_s17   ;;  %s1022_s15 = smov %s861_s16 }
 0x5b1   : > { %p11_p5 = scmp.ge.s32.totalorder %s14_s17, 4   ;;  %s1023_s16 = smov %s1025_s18 }
 0x5b3   :  { %13 = sbr.rel (!%p11_p5) target bundleno = 2 (0x2), region = 75 }

</bundles_post_ra>
